<compile_context>
chip_gen: v7x
topology: tpu7x:2x2x1
jax: 0.10.0
libtpu: 0.0.40
codegen_flags: <defaults>
</compile_context>

<pallas_src>
import numpy as np

import jax
import jax.numpy as jnp
from jax.experimental import pallas as pl
from jax.experimental.pallas import tpu as pltpu


# ----------------------------- model dimensions -----------------------------

BATCH = 2
IN_CH = 4
HEIGHT = 16
WIDTH = 16
N_CLASSES = 5

FREQ = WIDTH // 2 + 1                         # rfft bins along the last dim = 9
CONV_CH = [IN_CH, 16, 32, 64]                 # channel progression
CONV_W = [FREQ, FREQ // 2, FREQ // 4]         # conv spatial width per layer: 9, 4, 2
CONV_H = [HEIGHT, HEIGHT // 2, HEIGHT // 4]   # conv spatial height per layer: 16, 8, 4


# ----------------------------- fused Pallas kernel -----------------------------

def fused_forward_kernel(x_ref, dft_ref, m1_ref, a1_ref, b1_ref,
                         m2_ref, a2_ref, b2_ref, m3_ref, a3_ref, b3_ref,
                         fcw_ref, fcb_ref, out_ref, buf1, buf2, buf3):
    """Whole AudioClassifier forward for one image; all activations stay in VMEM."""
    f32 = jnp.float32
    cf = IN_CH * FREQ                                   # 36 spectrogram lanes, (c, f) layout

    # Zero the padded scratches (rows 0 / H+1 are the conv's vertical zero padding).
    buf1[...] = jnp.zeros_like(buf1)
    buf2[...] = jnp.zeros_like(buf2)
    buf3[...] = jnp.zeros_like(buf3)

    # --- torch.abs(torch.fft.rfft(x, dim=-1)) ; log1p(. + 1e-6) --------------------------
    # One matmul against the block-diagonal [cos | sin] basis emits re/im for all channels
    # already in the channels-last lane layout consumed by conv1.
    xh = x_ref[0]                                                      # (H, C*W)
    yr = jnp.dot(xh, dft_ref[...], preferred_element_type=f32)         # (H, 2*C*F) = [re | im]
    re = yr[:, 0:cf]
    im = yr[:, cf:2 * cf]
    mag = jnp.sqrt(re * re + im * im)
    buf1[1:HEIGHT + 1, :] = jnp.log(1.0 + (mag + 1e-6))                # == log1p(|rfft| + 1e-6)

    # --- conv3x3(pad=1) + folded BN + ReLU + MaxPool2d(2), per block ----------------------
    def conv_bn_relu_pool(buf_in, m_ref, a_ref, b_ref, h_in, wd, cout, sink):
        # Conv as 3 banded matmuls (one per kernel row dy).  Horizontal zero padding is
        # folded into the banded weight matrix; vertical padding is the zero rows of buf_in.
        acc = jnp.dot(buf_in[0:h_in, :], m_ref[0], preferred_element_type=f32)
        acc = acc + jnp.dot(buf_in[1:h_in + 1, :], m_ref[1], preferred_element_type=f32)
        acc = acc + jnp.dot(buf_in[2:h_in + 2, :], m_ref[2], preferred_element_type=f32)
        y = jnp.maximum(acc * a_ref[...] + b_ref[...], 0.0)            # (h_in, wd*cout)
        # 2x2 max pool (floor); pooled (1, cout) tiles go straight to `sink`.
        for p in range(h_in // 2):
            hrow = jnp.maximum(y[2 * p:2 * p + 1, :], y[2 * p + 1:2 * p + 2, :])
            for q in range(wd // 2):
                piece = jnp.maximum(hrow[:, (2 * q) * cout:(2 * q + 1) * cout],
                                    hrow[:, (2 * q + 1) * cout:(2 * q + 2) * cout])
                sink(p, q, piece)

    def into_buf2(p, q, v):
        buf2[p + 1:p + 2, q * CONV_CH[1]:(q + 1) * CONV_CH[1]] = v

    def into_buf3(p, q, v):
        buf3[p + 1:p + 2, q * CONV_CH[2]:(q + 1) * CONV_CH[2]] = v

    gap_parts = []

    def into_gap(p, q, v):
        gap_parts.append(v)

    conv_bn_relu_pool(buf1, m1_ref, a1_ref, b1_ref, CONV_H[0], CONV_W[0], CONV_CH[1], into_buf2)
    conv_bn_relu_pool(buf2, m2_ref, a2_ref, b2_ref, CONV_H[1], CONV_W[1], CONV_CH[2], into_buf3)
    conv_bn_relu_pool(buf3, m3_ref, a3_ref, b3_ref, CONV_H[2], CONV_W[2], CONV_CH[3], into_gap)

    # --- AdaptiveAvgPool2d((1,1)) + flatten + Linear(64, n_classes) ------------------------
    g = gap_parts[0]
    for v in gap_parts[1:]:
        g = g + v
    g = g * (1.0 / float(len(gap_parts)))                              # (1, 64)
    out_ref[0] = jnp.dot(g, fcw_ref[...], preferred_element_type=f32) + fcb_ref[...]


# ----------------------------- pallas_call wrapper -----------------------------

def audio_classifier_forward(x, kparams):
    """x: (N, C, H, W) float32 (PyTorch NCHW input). Returns (N, n_classes) logits."""
    (dft_big, m1, a1, b1, m2, a2, b2, m3, a3, b3, fcw, fcb) = kparams
    n, c, h, w = x.shape
    ncls = fcw.shape[1]
    # Fold channels into the DFT matmul's contraction dim: (N, H, C*W).
    xr = jnp.transpose(x, (0, 2, 1, 3)).reshape(n, h, c * w)

    weights = [dft_big, m1, a1, b1, m2, a2, b2, m3, a3, b3, fcw, fcb]

    def full_block(arr):
        nd = arr.ndim
        return pl.BlockSpec(arr.shape, lambda i, _nd=nd: (0,) * _nd)

    grid_spec = pltpu.PrefetchScalarGridSpec(
        num_scalar_prefetch=0,
        grid=(n,),                                     # one image per grid step
        in_specs=[pl.BlockSpec((1, h, c * w), lambda i: (i, 0, 0))]
                 + [full_block(a) for a in weights],
        out_specs=pl.BlockSpec((1, 1, ncls), lambda i: (i, 0, 0)),
        scratch_shapes=[
            pltpu.VMEM((CONV_H[0] + 2, IN_CH * FREQ), jnp.float32),            # (18, 36)
            pltpu.VMEM((CONV_H[1] + 2, CONV_W[1] * CONV_CH[1]), jnp.float32),  # (10, 64)
            pltpu.VMEM((CONV_H[2] + 2, CONV_W[2] * CONV_CH[2]), jnp.float32),  # (6, 64)
        ],
    )

    # Advisory cost estimate: matmul flops, sqrt+log transcendentals, HBM bytes.
    mm = [(CONV_H[0], m1), (CONV_H[1], m2), (CONV_H[2], m3)]
    flops = n * (2 * h * (c * w) * dft_big.shape[1]
                 + sum(3 * 2 * hh * m_.shape[1] * m_.shape[2] for hh, m_ in mm)
                 + 2 * fcw.shape[0] * fcw.shape[1])
    transcendentals = n * h * c * FREQ * 2
    bytes_accessed = int(xr.size * 4 + sum(a.size * 4 for a in weights) + n * ncls * 4)

    out = pl.pallas_call(
        fused_forward_kernel,
        out_shape=jax.ShapeDtypeStruct((n, 1, ncls), jnp.float32),
        grid_spec=grid_spec,
        compiler_params=pltpu.CompilerParams(
            dimension_semantics=("parallel",),         # batch split across TCs on v7x
            vmem_limit_bytes=32 * 1024 * 1024,
        ),
        cost_estimate=pl.CostEstimate(flops=flops, transcendentals=transcendentals,
                                      bytes_accessed=bytes_accessed),
    )(xr, *weights)
    return out[:, 0, :]


# ----------------------------- parameter construction -----------------------------

def _dft_basis_blockdiag(w, c):
    """Block-diagonal [cos | sin] real-DFT basis: (C*W, 2*C*F), output lane layout (c, f)."""
    f = w // 2 + 1
    n_idx = np.arange(w, dtype=np.float64)[:, None]
    k_idx = np.arange(f, dtype=np.float64)[None, :]
    ang = 2.0 * np.pi * n_idx * k_idx / w
    cos = np.cos(ang).astype(np.float32)
    sin = np.sin(ang).astype(np.float32)
    d = np.zeros((c * w, 2 * c * f), np.float32)
    for ci in range(c):
        d[ci * w:(ci + 1) * w, ci * f:(ci + 1) * f] = cos
        d[ci * w:(ci + 1) * w, c * f + ci * f:c * f + (ci + 1) * f] = sin
    return jnp.asarray(d)


def _banded_conv_matrix(wt, wd, cin_major):
    """Fold a (Cout, Cin, 3, 3) conv weight into 3 banded matrices (one per kernel row dy):
    m[dy, row(ci, wi), wo*Cout + co] = wt[co, ci, dy, wi - wo + 1] inside the band, else 0,
    so sum_dy padded_rows[h + dy] @ m[dy] is the 3x3 'same' convolution with the horizontal
    zero padding folded into the band structure."""
    wt = np.asarray(wt, np.float32)
    cout, cin = wt.shape[0], wt.shape[1]
    m = np.zeros((3, cin * wd, wd * cout), np.float32)
    for dy in range(3):
        for dx in range(3):
            blk = wt[:, :, dy, dx].T                     # (Cin, Cout)
            for wo in range(wd):
                wi = wo + dx - 1
                if 0 <= wi < wd:
                    if cin_major:
                        rows = np.arange(cin) * wd + wi  # layer 1: lanes are (c, f)
                    else:
                        rows = wi * cin + np.arange(cin)  # later layers: lanes are (w, c)
                    m[dy, rows, wo * cout:(wo + 1) * cout] = blk
    return jnp.asarray(m)


def init_params(key, in_channels, n_classes):
    """Deterministic inference-mode parameters (conv + folded BN + FC), in both kernel
    format (banded matrices, tiled scale/shift) and raw format (for the JAX reference)."""
    chans = list(zip(CONV_CH[:-1], CONV_CH[1:]))
    keys = jax.random.split(key, 4)
    raw_layers = []
    kernel_layers = []
    for i, (cin, cout) in enumerate(chans):
        ks = jax.random.split(keys[i], 6)
        wt = 0.1 * jax.random.normal(ks[0], (cout, cin, 3, 3), jnp.float32)
        b = 0.1 * jax.random.normal(ks[1], (cout,), jnp.float32)
        gamma = 1.0 + 0.1 * jax.random.normal(ks[2], (cout,), jnp.float32)
        beta = 0.1 * jax.random.normal(ks[3], (cout,), jnp.float32)
        mean = 0.1 * jax.random.normal(ks[4], (cout,), jnp.float32)
        var = 0.5 + jax.random.uniform(ks[5], (cout,), jnp.float32)
        scale = gamma / jnp.sqrt(var + 1e-5)              # inference-mode BN fold
        shift = beta + scale * (b - mean)                 # conv bias folded in
        raw_layers.append((wt, scale, shift))
        wd = CONV_W[i]
        kernel_layers.append((
            _banded_conv_matrix(wt, wd, cin_major=(i == 0)),
            jnp.tile(scale, wd).reshape(1, wd * cout),
            jnp.tile(shift, wd).reshape(1, wd * cout),
        ))
    kf = jax.random.split(keys[3], 2)
    fc_w = 0.1 * jax.random.normal(kf[0], (n_classes, CONV_CH[-1]), jnp.float32)
    fc_b = 0.1 * jax.random.normal(kf[1], (n_classes,), jnp.float32)

    dft_big = _dft_basis_blockdiag(WIDTH, in_channels)
    (m1, a1, b1), (m2, a2, b2), (m3, a3, b3) = kernel_layers
    kparams = (dft_big, m1, a1, b1, m2, a2, b2, m3, a3, b3,
               fc_w.T, fc_b.reshape(1, -1))
    return kparams, raw_layers, fc_w.T, fc_b


# ----------------------------- plain-JAX reference -----------------------------

def reference_forward(x, raw_layers, fc_w, fc_b):
    hp = jax.lax.Precision.HIGHEST
    h = jnp.log1p(jnp.abs(jnp.fft.rfft(x, axis=-1)) + 1e-6).astype(jnp.float32)
    for (wt, scale, shift) in raw_layers:
        y = jax.lax.conv_general_dilated(
            h, wt, window_strides=(1, 1), padding=((1, 1), (1, 1)),
            dimension_numbers=("NCHW", "OIHW", "NCHW"), precision=hp)
        y = jnp.maximum(y * scale[None, :, None, None] + shift[None, :, None, None], 0.0)
        n_, c_, hh, ww = y.shape
        hp2, wp2 = hh // 2, ww // 2
        y = y[:, :, :2 * hp2, :2 * wp2].reshape(n_, c_, hp2, 2, wp2, 2)
        h = jnp.max(y, axis=(3, 5))
    g = jnp.mean(h, axis=(2, 3))
    return jnp.dot(g, fc_w, precision=hp) + fc_b


# ----------------------------- main -----------------------------

if __name__ == "__main__":
    key = jax.random.PRNGKey(0)
    kx, kp = jax.random.split(key)
    x = jax.random.normal(kx, (BATCH, IN_CH, HEIGHT, WIDTH), jnp.float32)
    kparams, raw_layers, fc_w_t, fc_b = init_params(kp, IN_CH, N_CLASSES)

    out = audio_classifier_forward(x, kparams)
    out = jax.block_until_ready(out)

    ref = reference_forward(x, raw_layers, fc_w_t, fc_b)
    assert out.shape == (BATCH, N_CLASSES)
    max_err = float(jnp.max(jnp.abs(out - ref)))
    # Tolerance tightened 20x vs the previous version; the remaining bound is MXU f32
    # matmul precision vs the HIGHEST-precision XLA reference, not kernel structure.
    assert max_err < 5e-3, f"Pallas output mismatch vs reference (max abs err {max_err})"
    print("KERNEL_OK")
</pallas_src>

<mosaic_0001>
module attributes {stable_mosaic.version = 11 : i64} {
  func.func @fused_forward_kernel(%arg0: i32, %arg1: memref<1x16x64xf32, #tpu.memory_space<vmem>>, %arg2: memref<64x72xf32, #tpu.memory_space<vmem>>, %arg3: memref<3x36x144xf32, #tpu.memory_space<vmem>>, %arg4: memref<1x144xf32, #tpu.memory_space<vmem>>, %arg5: memref<1x144xf32, #tpu.memory_space<vmem>>, %arg6: memref<3x64x128xf32, #tpu.memory_space<vmem>>, %arg7: memref<1x128xf32, #tpu.memory_space<vmem>>, %arg8: memref<1x128xf32, #tpu.memory_space<vmem>>, %arg9: memref<3x64x128xf32, #tpu.memory_space<vmem>>, %arg10: memref<1x128xf32, #tpu.memory_space<vmem>>, %arg11: memref<1x128xf32, #tpu.memory_space<vmem>>, %arg12: memref<64x5xf32, #tpu.memory_space<vmem>>, %arg13: memref<1x5xf32, #tpu.memory_space<vmem>>, %arg14: memref<1x1x5xf32, #tpu.memory_space<vmem>>, %arg15: memref<18x36xf32, #tpu.memory_space<vmem>>, %arg16: memref<10x64xf32, #tpu.memory_space<vmem>>, %arg17: memref<6x64xf32, #tpu.memory_space<vmem>>) attributes {dimension_semantics = [#tpu.dimension_semantics<parallel>], iteration_bounds = array<i64: 2>, scalar_prefetch = 0 : i64, scratch_operands = 3 : i64, tpu.core_type = #tpu.core_type<tc>, window_params = [{transform_indices = @transform_0, window_bounds = array<i64: 1, 16, 64>}, {pipeline_mode = #tpu.pipeline_mode<synchronous>, transform_indices = @transform_1, window_bounds = array<i64: 64, 72>}, {pipeline_mode = #tpu.pipeline_mode<synchronous>, transform_indices = @transform_2, window_bounds = array<i64: 3, 36, 144>}, {pipeline_mode = #tpu.pipeline_mode<synchronous>, transform_indices = @transform_3, window_bounds = array<i64: 1, 144>}, {pipeline_mode = #tpu.pipeline_mode<synchronous>, transform_indices = @transform_4, window_bounds = array<i64: 1, 144>}, {pipeline_mode = #tpu.pipeline_mode<synchronous>, transform_indices = @transform_5, window_bounds = array<i64: 3, 64, 128>}, {pipeline_mode = #tpu.pipeline_mode<synchronous>, transform_indices = @transform_6, window_bounds = array<i64: 1, 128>}, {pipeline_mode = #tpu.pipeline_mode<synchronous>, transform_indices = @transform_7, window_bounds = array<i64: 1, 128>}, {pipeline_mode = #tpu.pipeline_mode<synchronous>, transform_indices = @transform_8, window_bounds = array<i64: 3, 64, 128>}, {pipeline_mode = #tpu.pipeline_mode<synchronous>, transform_indices = @transform_9, window_bounds = array<i64: 1, 128>}, {pipeline_mode = #tpu.pipeline_mode<synchronous>, transform_indices = @transform_10, window_bounds = array<i64: 1, 128>}, {pipeline_mode = #tpu.pipeline_mode<synchronous>, transform_indices = @transform_11, window_bounds = array<i64: 64, 5>}, {pipeline_mode = #tpu.pipeline_mode<synchronous>, transform_indices = @transform_12, window_bounds = array<i64: 1, 5>}, {transform_indices = @transform_13, window_bounds = array<i64: 1, 1, 5>}]} {
    %cst = arith.constant 0.000000e+00 : f32
    %0 = vector.broadcast %cst : f32 to vector<18x36xf32>
    %c0 = arith.constant 0 : index
    %c0_0 = arith.constant 0 : index
    %1 = vector.load %arg15[%c0, %c0_0] : memref<18x36xf32, #tpu.memory_space<vmem>>, vector<18x36xf32>
    tpu.vector_store %arg15[%c0, %c0_0], %0 {strides = array<i32>} : memref<18x36xf32, #tpu.memory_space<vmem>>, vector<18x36xf32>,
    %cst_1 = arith.constant 0.000000e+00 : f32
    %2 = vector.broadcast %cst_1 : f32 to vector<10x64xf32>
    %c0_2 = arith.constant 0 : index
    %c0_3 = arith.constant 0 : index
    %3 = vector.load %arg16[%c0_2, %c0_3] : memref<10x64xf32, #tpu.memory_space<vmem>>, vector<10x64xf32>
    tpu.vector_store %arg16[%c0_2, %c0_3], %2 {strides = array<i32>} : memref<10x64xf32, #tpu.memory_space<vmem>>, vector<10x64xf32>,
    %cst_4 = arith.constant 0.000000e+00 : f32
    %4 = vector.broadcast %cst_4 : f32 to vector<6x64xf32>
    %c0_5 = arith.constant 0 : index
    %c0_6 = arith.constant 0 : index
    %5 = vector.load %arg17[%c0_5, %c0_6] : memref<6x64xf32, #tpu.memory_space<vmem>>, vector<6x64xf32>
    tpu.vector_store %arg17[%c0_5, %c0_6], %4 {strides = array<i32>} : memref<6x64xf32, #tpu.memory_space<vmem>>, vector<6x64xf32>,
    %c0_7 = arith.constant 0 : index
    %c0_8 = arith.constant 0 : index
    %c0_9 = arith.constant 0 : index
    %6 = vector.load %arg1[%c0_7, %c0_8, %c0_9] : memref<1x16x64xf32, #tpu.memory_space<vmem>>, vector<1x16x64xf32>
    %7 = vector.shape_cast %6 : vector<1x16x64xf32> to vector<16x64xf32>
    %c0_10 = arith.constant 0 : index
    %c0_11 = arith.constant 0 : index
    %8 = vector.load %arg2[%c0_10, %c0_11] : memref<64x72xf32, #tpu.memory_space<vmem>>, vector<64x72xf32>
    %cst_12 = arith.constant dense<0.000000e+00> : vector<16x72xf32>
    %9 = tpu.matmul %7, %8, %cst_12 {dimension_numbers = #tpu.dot_dimension_numbers<[1], [0], [0], [1], [0, 0, 1, 1], [], []>} : vector<16x64xf32>, vector<64x72xf32>, vector<16x72xf32> -> vector<16x72xf32>
    %10 = vector.extract_strided_slice %9 {offsets = [0, 0], sizes = [16, 36], strides = [1, 1]} : vector<16x72xf32> to vector<16x36xf32>
    %11 = vector.extract_strided_slice %9 {offsets = [0, 36], sizes = [16, 36], strides = [1, 1]} : vector<16x72xf32> to vector<16x36xf32>
    %12 = arith.mulf %10, %10 : vector<16x36xf32>
    %13 = arith.mulf %11, %11 : vector<16x36xf32>
    %14 = arith.addf %12, %13 : vector<16x36xf32>
    %15 = math.sqrt %14 : vector<16x36xf32>
    %cst_13 = arith.constant 9.99999997E-7 : f32
    %16 = vector.broadcast %cst_13 : f32 to vector<16x36xf32>
    %17 = arith.addf %15, %16 : vector<16x36xf32>
    %cst_14 = arith.constant 1.000000e+00 : f32
    %18 = vector.broadcast %cst_14 : f32 to vector<16x36xf32>
    %19 = arith.addf %18, %17 : vector<16x36xf32>
    %20 = math.log %19 : vector<16x36xf32>
    %c1 = arith.constant 1 : index
    %c0_15 = arith.constant 0 : index
    %21 = vector.load %arg15[%c1, %c0_15] : memref<18x36xf32, #tpu.memory_space<vmem>>, vector<16x36xf32>
    tpu.vector_store %arg15[%c1, %c0_15], %20 {strides = array<i32>} : memref<18x36xf32, #tpu.memory_space<vmem>>, vector<16x36xf32>,
    %c0_16 = arith.constant 0 : index
    %c0_17 = arith.constant 0 : index
    %22 = vector.load %arg15[%c0_16, %c0_17] : memref<18x36xf32, #tpu.memory_space<vmem>>, vector<16x36xf32>
    %c0_18 = arith.constant 0 : index
    %c0_19 = arith.constant 0 : index
    %c0_20 = arith.constant 0 : index
    %23 = vector.load %arg3[%c0_18, %c0_19, %c0_20] : memref<3x36x144xf32, #tpu.memory_space<vmem>>, vector<1x36x144xf32>
    %24 = vector.shape_cast %23 : vector<1x36x144xf32> to vector<36x144xf32>
    %cst_21 = arith.constant dense<0.000000e+00> : vector<16x144xf32>
    %25 = tpu.matmul %22, %24, %cst_21 {dimension_numbers = #tpu.dot_dimension_numbers<[1], [0], [0], [1], [0, 0, 1, 1], [], []>} : vector<16x36xf32>, vector<36x144xf32>, vector<16x144xf32> -> vector<16x144xf32>
    %c1_22 = arith.constant 1 : index
    %c0_23 = arith.constant 0 : index
    %26 = vector.load %arg15[%c1_22, %c0_23] : memref<18x36xf32, #tpu.memory_space<vmem>>, vector<16x36xf32>
    %c1_24 = arith.constant 1 : index
    %c0_25 = arith.constant 0 : index
    %c0_26 = arith.constant 0 : index
    %27 = vector.load %arg3[%c1_24, %c0_25, %c0_26] : memref<3x36x144xf32, #tpu.memory_space<vmem>>, vector<1x36x144xf32>
    %28 = vector.shape_cast %27 : vector<1x36x144xf32> to vector<36x144xf32>
    %cst_27 = arith.constant dense<0.000000e+00> : vector<16x144xf32>
    %29 = tpu.matmul %26, %28, %cst_27 {dimension_numbers = #tpu.dot_dimension_numbers<[1], [0], [0], [1], [0, 0, 1, 1], [], []>} : vector<16x36xf32>, vector<36x144xf32>, vector<16x144xf32> -> vector<16x144xf32>
    %30 = arith.addf %25, %29 : vector<16x144xf32>
    %c2 = arith.constant 2 : index
    %c0_28 = arith.constant 0 : index
    %31 = vector.load %arg15[%c2, %c0_28] : memref<18x36xf32, #tpu.memory_space<vmem>>, vector<16x36xf32>
    %c2_29 = arith.constant 2 : index
    %c0_30 = arith.constant 0 : index
    %c0_31 = arith.constant 0 : index
    %32 = vector.load %arg3[%c2_29, %c0_30, %c0_31] : memref<3x36x144xf32, #tpu.memory_space<vmem>>, vector<1x36x144xf32>
    %33 = vector.shape_cast %32 : vector<1x36x144xf32> to vector<36x144xf32>
    %cst_32 = arith.constant dense<0.000000e+00> : vector<16x144xf32>
    %34 = tpu.matmul %31, %33, %cst_32 {dimension_numbers = #tpu.dot_dimension_numbers<[1], [0], [0], [1], [0, 0, 1, 1], [], []>} : vector<16x36xf32>, vector<36x144xf32>, vector<16x144xf32> -> vector<16x144xf32>
    %35 = arith.addf %30, %34 : vector<16x144xf32>
    %c0_33 = arith.constant 0 : index
    %c0_34 = arith.constant 0 : index
    %36 = vector.load %arg4[%c0_33, %c0_34] : memref<1x144xf32, #tpu.memory_space<vmem>>, vector<1x144xf32>
    %37 = vector.broadcast %36 : vector<1x144xf32> to vector<16x144xf32>
    %38 = arith.mulf %35, %37 : vector<16x144xf32>
    %c0_35 = arith.constant 0 : index
    %c0_36 = arith.constant 0 : index
    %39 = vector.load %arg5[%c0_35, %c0_36] : memref<1x144xf32, #tpu.memory_space<vmem>>, vector<1x144xf32>
    %40 = vector.broadcast %39 : vector<1x144xf32> to vector<16x144xf32>
    %41 = arith.addf %38, %40 : vector<16x144xf32>
    %cst_37 = arith.constant 0.000000e+00 : f32
    %42 = vector.broadcast %cst_37 : f32 to vector<16x144xf32>
    %43 = arith.maximumf %41, %42 : vector<16x144xf32>
    %44 = vector.extract_strided_slice %43 {offsets = [0, 0], sizes = [1, 144], strides = [1, 1]} : vector<16x144xf32> to vector<1x144xf32>
    %45 = vector.extract_strided_slice %43 {offsets = [1, 0], sizes = [1, 144], strides = [1, 1]} : vector<16x144xf32> to vector<1x144xf32>
    %46 = arith.maximumf %44, %45 : vector<1x144xf32>
    %47 = vector.extract_strided_slice %46 {offsets = [0, 0], sizes = [1, 16], strides = [1, 1]} : vector<1x144xf32> to vector<1x16xf32>
    %48 = vector.extract_strided_slice %46 {offsets = [0, 16], sizes = [1, 16], strides = [1, 1]} : vector<1x144xf32> to vector<1x16xf32>
    %49 = arith.maximumf %47, %48 : vector<1x16xf32>
    %c1_38 = arith.constant 1 : index
    %c0_39 = arith.constant 0 : index
    %50 = vector.load %arg16[%c1_38, %c0_39] : memref<10x64xf32, #tpu.memory_space<vmem>>, vector<1x16xf32>
    tpu.vector_store %arg16[%c1_38, %c0_39], %49 {strides = array<i32>} : memref<10x64xf32, #tpu.memory_space<vmem>>, vector<1x16xf32>,
    %51 = vector.extract_strided_slice %46 {offsets = [0, 32], sizes = [1, 16], strides = [1, 1]} : vector<1x144xf32> to vector<1x16xf32>
    %52 = vector.extract_strided_slice %46 {offsets = [0, 48], sizes = [1, 16], strides = [1, 1]} : vector<1x144xf32> to vector<1x16xf32>
    %53 = arith.maximumf %51, %52 : vector<1x16xf32>
    %c1_40 = arith.constant 1 : index
    %c16 = arith.constant 16 : index
    %54 = vector.load %arg16[%c1_40, %c16] : memref<10x64xf32, #tpu.memory_space<vmem>>, vector<1x16xf32>
    tpu.vector_store %arg16[%c1_40, %c16], %53 {strides = array<i32>} : memref<10x64xf32, #tpu.memory_space<vmem>>, vector<1x16xf32>,
    %55 = vector.extract_strided_slice %46 {offsets = [0, 64], sizes = [1, 16], strides = [1, 1]} : vector<1x144xf32> to vector<1x16xf32>
    %56 = vector.extract_strided_slice %46 {offsets = [0, 80], sizes = [1, 16], strides = [1, 1]} : vector<1x144xf32> to vector<1x16xf32>
    %57 = arith.maximumf %55, %56 : vector<1x16xf32>
    %c1_41 = arith.constant 1 : index
    %c32 = arith.constant 32 : index
    %58 = vector.load %arg16[%c1_41, %c32] : memref<10x64xf32, #tpu.memory_space<vmem>>, vector<1x16xf32>
    tpu.vector_store %arg16[%c1_41, %c32], %57 {strides = array<i32>} : memref<10x64xf32, #tpu.memory_space<vmem>>, vector<1x16xf32>,
    %59 = vector.extract_strided_slice %46 {offsets = [0, 96], sizes = [1, 16], strides = [1, 1]} : vector<1x144xf32> to vector<1x16xf32>
    %60 = vector.extract_strided_slice %46 {offsets = [0, 112], sizes = [1, 16], strides = [1, 1]} : vector<1x144xf32> to vector<1x16xf32>
    %61 = arith.maximumf %59, %60 : vector<1x16xf32>
    %c1_42 = arith.constant 1 : index
    %c48 = arith.constant 48 : index
    %62 = vector.load %arg16[%c1_42, %c48] : memref<10x64xf32, #tpu.memory_space<vmem>>, vector<1x16xf32>
    tpu.vector_store %arg16[%c1_42, %c48], %61 {strides = array<i32>} : memref<10x64xf32, #tpu.memory_space<vmem>>, vector<1x16xf32>,
    %63 = vector.extract_strided_slice %43 {offsets = [2, 0], sizes = [1, 144], strides = [1, 1]} : vector<16x144xf32> to vector<1x144xf32>
    %64 = vector.extract_strided_slice %43 {offsets = [3, 0], sizes = [1, 144], strides = [1, 1]} : vector<16x144xf32> to vector<1x144xf32>
    %65 = arith.maximumf %63, %64 : vector<1x144xf32>
    %66 = vector.extract_strided_slice %65 {offsets = [0, 0], sizes = [1, 16], strides = [1, 1]} : vector<1x144xf32> to vector<1x16xf32>
    %67 = vector.extract_strided_slice %65 {offsets = [0, 16], sizes = [1, 16], strides = [1, 1]} : vector<1x144xf32> to vector<1x16xf32>
    %68 = arith.maximumf %66, %67 : vector<1x16xf32>
    %c2_43 = arith.constant 2 : index
    %c0_44 = arith.constant 0 : index
    %69 = vector.load %arg16[%c2_43, %c0_44] : memref<10x64xf32, #tpu.memory_space<vmem>>, vector<1x16xf32>
    tpu.vector_store %arg16[%c2_43, %c0_44], %68 {strides = array<i32>} : memref<10x64xf32, #tpu.memory_space<vmem>>, vector<1x16xf32>,
    %70 = vector.extract_strided_slice %65 {offsets = [0, 32], sizes = [1, 16], strides = [1, 1]} : vector<1x144xf32> to vector<1x16xf32>
    %71 = vector.extract_strided_slice %65 {offsets = [0, 48], sizes = [1, 16], strides = [1, 1]} : vector<1x144xf32> to vector<1x16xf32>
    %72 = arith.maximumf %70, %71 : vector<1x16xf32>
    %c2_45 = arith.constant 2 : index
    %c16_46 = arith.constant 16 : index
    %73 = vector.load %arg16[%c2_45, %c16_46] : memref<10x64xf32, #tpu.memory_space<vmem>>, vector<1x16xf32>
    tpu.vector_store %arg16[%c2_45, %c16_46], %72 {strides = array<i32>} : memref<10x64xf32, #tpu.memory_space<vmem>>, vector<1x16xf32>,
    %74 = vector.extract_strided_slice %65 {offsets = [0, 64], sizes = [1, 16], strides = [1, 1]} : vector<1x144xf32> to vector<1x16xf32>
    %75 = vector.extract_strided_slice %65 {offsets = [0, 80], sizes = [1, 16], strides = [1, 1]} : vector<1x144xf32> to vector<1x16xf32>
    %76 = arith.maximumf %74, %75 : vector<1x16xf32>
    %c2_47 = arith.constant 2 : index
    %c32_48 = arith.constant 32 : index
    %77 = vector.load %arg16[%c2_47, %c32_48] : memref<10x64xf32, #tpu.memory_space<vmem>>, vector<1x16xf32>
    tpu.vector_store %arg16[%c2_47, %c32_48], %76 {strides = array<i32>} : memref<10x64xf32, #tpu.memory_space<vmem>>, vector<1x16xf32>,
    %78 = vector.extract_strided_slice %65 {offsets = [0, 96], sizes = [1, 16], strides = [1, 1]} : vector<1x144xf32> to vector<1x16xf32>
    %79 = vector.extract_strided_slice %65 {offsets = [0, 112], sizes = [1, 16], strides = [1, 1]} : vector<1x144xf32> to vector<1x16xf32>
    %80 = arith.maximumf %78, %79 : vector<1x16xf32>
    %c2_49 = arith.constant 2 : index
    %c48_50 = arith.constant 48 : index
    %81 = vector.load %arg16[%c2_49, %c48_50] : memref<10x64xf32, #tpu.memory_space<vmem>>, vector<1x16xf32>
    tpu.vector_store %arg16[%c2_49, %c48_50], %80 {strides = array<i32>} : memref<10x64xf32, #tpu.memory_space<vmem>>, vector<1x16xf32>,
    %82 = vector.extract_strided_slice %43 {offsets = [4, 0], sizes = [1, 144], strides = [1, 1]} : vector<16x144xf32> to vector<1x144xf32>
    %83 = vector.extract_strided_slice %43 {offsets = [5, 0], sizes = [1, 144], strides = [1, 1]} : vector<16x144xf32> to vector<1x144xf32>
    %84 = arith.maximumf %82, %83 : vector<1x144xf32>
    %85 = vector.extract_strided_slice %84 {offsets = [0, 0], sizes = [1, 16], strides = [1, 1]} : vector<1x144xf32> to vector<1x16xf32>
    %86 = vector.extract_strided_slice %84 {offsets = [0, 16], sizes = [1, 16], strides = [1, 1]} : vector<1x144xf32> to vector<1x16xf32>
    %87 = arith.maximumf %85, %86 : vector<1x16xf32>
    %c3 = arith.constant 3 : index
    %c0_51 = arith.constant 0 : index
    %88 = vector.load %arg16[%c3, %c0_51] : memref<10x64xf32, #tpu.memory_space<vmem>>, vector<1x16xf32>
    tpu.vector_store %arg16[%c3, %c0_51], %87 {strides = array<i32>} : memref<10x64xf32, #tpu.memory_space<vmem>>, vector<1x16xf32>,
    %89 = vector.extract_strided_slice %84 {offsets = [0, 32], sizes = [1, 16], strides = [1, 1]} : vector<1x144xf32> to vector<1x16xf32>
    %90 = vector.extract_strided_slice %84 {offsets = [0, 48], sizes = [1, 16], strides = [1, 1]} : vector<1x144xf32> to vector<1x16xf32>
    %91 = arith.maximumf %89, %90 : vector<1x16xf32>
    %c3_52 = arith.constant 3 : index
    %c16_53 = arith.constant 16 : index
    %92 = vector.load %arg16[%c3_52, %c16_53] : memref<10x64xf32, #tpu.memory_space<vmem>>, vector<1x16xf32>
    tpu.vector_store %arg16[%c3_52, %c16_53], %91 {strides = array<i32>} : memref<10x64xf32, #tpu.memory_space<vmem>>, vector<1x16xf32>,
    %93 = vector.extract_strided_slice %84 {offsets = [0, 64], sizes = [1, 16], strides = [1, 1]} : vector<1x144xf32> to vector<1x16xf32>
    %94 = vector.extract_strided_slice %84 {offsets = [0, 80], sizes = [1, 16], strides = [1, 1]} : vector<1x144xf32> to vector<1x16xf32>
    %95 = arith.maximumf %93, %94 : vector<1x16xf32>
    %c3_54 = arith.constant 3 : index
    %c32_55 = arith.constant 32 : index
    %96 = vector.load %arg16[%c3_54, %c32_55] : memref<10x64xf32, #tpu.memory_space<vmem>>, vector<1x16xf32>
    tpu.vector_store %arg16[%c3_54, %c32_55], %95 {strides = array<i32>} : memref<10x64xf32, #tpu.memory_space<vmem>>, vector<1x16xf32>,
    %97 = vector.extract_strided_slice %84 {offsets = [0, 96], sizes = [1, 16], strides = [1, 1]} : vector<1x144xf32> to vector<1x16xf32>
    %98 = vector.extract_strided_slice %84 {offsets = [0, 112], sizes = [1, 16], strides = [1, 1]} : vector<1x144xf32> to vector<1x16xf32>
    %99 = arith.maximumf %97, %98 : vector<1x16xf32>
    %c3_56 = arith.constant 3 : index
    %c48_57 = arith.constant 48 : index
    %100 = vector.load %arg16[%c3_56, %c48_57] : memref<10x64xf32, #tpu.memory_space<vmem>>, vector<1x16xf32>
    tpu.vector_store %arg16[%c3_56, %c48_57], %99 {strides = array<i32>} : memref<10x64xf32, #tpu.memory_space<vmem>>, vector<1x16xf32>,
    %101 = vector.extract_strided_slice %43 {offsets = [6, 0], sizes = [1, 144], strides = [1, 1]} : vector<16x144xf32> to vector<1x144xf32>
    %102 = vector.extract_strided_slice %43 {offsets = [7, 0], sizes = [1, 144], strides = [1, 1]} : vector<16x144xf32> to vector<1x144xf32>
    %103 = arith.maximumf %101, %102 : vector<1x144xf32>
    %104 = vector.extract_strided_slice %103 {offsets = [0, 0], sizes = [1, 16], strides = [1, 1]} : vector<1x144xf32> to vector<1x16xf32>
    %105 = vector.extract_strided_slice %103 {offsets = [0, 16], sizes = [1, 16], strides = [1, 1]} : vector<1x144xf32> to vector<1x16xf32>
    %106 = arith.maximumf %104, %105 : vector<1x16xf32>
    %c4 = arith.constant 4 : index
    %c0_58 = arith.constant 0 : index
    %107 = vector.load %arg16[%c4, %c0_58] : memref<10x64xf32, #tpu.memory_space<vmem>>, vector<1x16xf32>
    tpu.vector_store %arg16[%c4, %c0_58], %106 {strides = array<i32>} : memref<10x64xf32, #tpu.memory_space<vmem>>, vector<1x16xf32>,
    %108 = vector.extract_strided_slice %103 {offsets = [0, 32], sizes = [1, 16], strides = [1, 1]} : vector<1x144xf32> to vector<1x16xf32>
    %109 = vector.extract_strided_slice %103 {offsets = [0, 48], sizes = [1, 16], strides = [1, 1]} : vector<1x144xf32> to vector<1x16xf32>
    %110 = arith.maximumf %108, %109 : vector<1x16xf32>
    %c4_59 = arith.constant 4 : index
    %c16_60 = arith.constant 16 : index
    %111 = vector.load %arg16[%c4_59, %c16_60] : memref<10x64xf32, #tpu.memory_space<vmem>>, vector<1x16xf32>
    tpu.vector_store %arg16[%c4_59, %c16_60], %110 {strides = array<i32>} : memref<10x64xf32, #tpu.memory_space<vmem>>, vector<1x16xf32>,
    %112 = vector.extract_strided_slice %103 {offsets = [0, 64], sizes = [1, 16], strides = [1, 1]} : vector<1x144xf32> to vector<1x16xf32>
    %113 = vector.extract_strided_slice %103 {offsets = [0, 80], sizes = [1, 16], strides = [1, 1]} : vector<1x144xf32> to vector<1x16xf32>
    %114 = arith.maximumf %112, %113 : vector<1x16xf32>
    %c4_61 = arith.constant 4 : index
    %c32_62 = arith.constant 32 : index
    %115 = vector.load %arg16[%c4_61, %c32_62] : memref<10x64xf32, #tpu.memory_space<vmem>>, vector<1x16xf32>
    tpu.vector_store %arg16[%c4_61, %c32_62], %114 {strides = array<i32>} : memref<10x64xf32, #tpu.memory_space<vmem>>, vector<1x16xf32>,
    %116 = vector.extract_strided_slice %103 {offsets = [0, 96], sizes = [1, 16], strides = [1, 1]} : vector<1x144xf32> to vector<1x16xf32>
    %117 = vector.extract_strided_slice %103 {offsets = [0, 112], sizes = [1, 16], strides = [1, 1]} : vector<1x144xf32> to vector<1x16xf32>
    %118 = arith.maximumf %116, %117 : vector<1x16xf32>
    %c4_63 = arith.constant 4 : index
    %c48_64 = arith.constant 48 : index
    %119 = vector.load %arg16[%c4_63, %c48_64] : memref<10x64xf32, #tpu.memory_space<vmem>>, vector<1x16xf32>
    tpu.vector_store %arg16[%c4_63, %c48_64], %118 {strides = array<i32>} : memref<10x64xf32, #tpu.memory_space<vmem>>, vector<1x16xf32>,
    %120 = vector.extract_strided_slice %43 {offsets = [8, 0], sizes = [1, 144], strides = [1, 1]} : vector<16x144xf32> to vector<1x144xf32>
    %121 = vector.extract_strided_slice %43 {offsets = [9, 0], sizes = [1, 144], strides = [1, 1]} : vector<16x144xf32> to vector<1x144xf32>
    %122 = arith.maximumf %120, %121 : vector<1x144xf32>
    %123 = vector.extract_strided_slice %122 {offsets = [0, 0], sizes = [1, 16], strides = [1, 1]} : vector<1x144xf32> to vector<1x16xf32>
    %124 = vector.extract_strided_slice %122 {offsets = [0, 16], sizes = [1, 16], strides = [1, 1]} : vector<1x144xf32> to vector<1x16xf32>
    %125 = arith.maximumf %123, %124 : vector<1x16xf32>
    %c5 = arith.constant 5 : index
    %c0_65 = arith.constant 0 : index
    %126 = vector.load %arg16[%c5, %c0_65] : memref<10x64xf32, #tpu.memory_space<vmem>>, vector<1x16xf32>
    tpu.vector_store %arg16[%c5, %c0_65], %125 {strides = array<i32>} : memref<10x64xf32, #tpu.memory_space<vmem>>, vector<1x16xf32>,
    %127 = vector.extract_strided_slice %122 {offsets = [0, 32], sizes = [1, 16], strides = [1, 1]} : vector<1x144xf32> to vector<1x16xf32>
    %128 = vector.extract_strided_slice %122 {offsets = [0, 48], sizes = [1, 16], strides = [1, 1]} : vector<1x144xf32> to vector<1x16xf32>
    %129 = arith.maximumf %127, %128 : vector<1x16xf32>
    %c5_66 = arith.constant 5 : index
    %c16_67 = arith.constant 16 : index
    %130 = vector.load %arg16[%c5_66, %c16_67] : memref<10x64xf32, #tpu.memory_space<vmem>>, vector<1x16xf32>
    tpu.vector_store %arg16[%c5_66, %c16_67], %129 {strides = array<i32>} : memref<10x64xf32, #tpu.memory_space<vmem>>, vector<1x16xf32>,
    %131 = vector.extract_strided_slice %122 {offsets = [0, 64], sizes = [1, 16], strides = [1, 1]} : vector<1x144xf32> to vector<1x16xf32>
    %132 = vector.extract_strided_slice %122 {offsets = [0, 80], sizes = [1, 16], strides = [1, 1]} : vector<1x144xf32> to vector<1x16xf32>
    %133 = arith.maximumf %131, %132 : vector<1x16xf32>
    %c5_68 = arith.constant 5 : index
    %c32_69 = arith.constant 32 : index
    %134 = vector.load %arg16[%c5_68, %c32_69] : memref<10x64xf32, #tpu.memory_space<vmem>>, vector<1x16xf32>
    tpu.vector_store %arg16[%c5_68, %c32_69], %133 {strides = array<i32>} : memref<10x64xf32, #tpu.memory_space<vmem>>, vector<1x16xf32>,
    %135 = vector.extract_strided_slice %122 {offsets = [0, 96], sizes = [1, 16], strides = [1, 1]} : vector<1x144xf32> to vector<1x16xf32>
    %136 = vector.extract_strided_slice %122 {offsets = [0, 112], sizes = [1, 16], strides = [1, 1]} : vector<1x144xf32> to vector<1x16xf32>
    %137 = arith.maximumf %135, %136 : vector<1x16xf32>
    %c5_70 = arith.constant 5 : index
    %c48_71 = arith.constant 48 : index
    %138 = vector.load %arg16[%c5_70, %c48_71] : memref<10x64xf32, #tpu.memory_space<vmem>>, vector<1x16xf32>
    tpu.vector_store %arg16[%c5_70, %c48_71], %137 {strides = array<i32>} : memref<10x64xf32, #tpu.memory_space<vmem>>, vector<1x16xf32>,
    %139 = vector.extract_strided_slice %43 {offsets = [10, 0], sizes = [1, 144], strides = [1, 1]} : vector<16x144xf32> to vector<1x144xf32>
    %140 = vector.extract_strided_slice %43 {offsets = [11, 0], sizes = [1, 144], strides = [1, 1]} : vector<16x144xf32> to vector<1x144xf32>
    %141 = arith.maximumf %139, %140 : vector<1x144xf32>
    %142 = vector.extract_strided_slice %141 {offsets = [0, 0], sizes = [1, 16], strides = [1, 1]} : vector<1x144xf32> to vector<1x16xf32>
    %143 = vector.extract_strided_slice %141 {offsets = [0, 16], sizes = [1, 16], strides = [1, 1]} : vector<1x144xf32> to vector<1x16xf32>
    %144 = arith.maximumf %142, %143 : vector<1x16xf32>
    %c6 = arith.constant 6 : index
    %c0_72 = arith.constant 0 : index
    %145 = vector.load %arg16[%c6, %c0_72] : memref<10x64xf32, #tpu.memory_space<vmem>>, vector<1x16xf32>
    tpu.vector_store %arg16[%c6, %c0_72], %144 {strides = array<i32>} : memref<10x64xf32, #tpu.memory_space<vmem>>, vector<1x16xf32>,
    %146 = vector.extract_strided_slice %141 {offsets = [0, 32], sizes = [1, 16], strides = [1, 1]} : vector<1x144xf32> to vector<1x16xf32>
    %147 = vector.extract_strided_slice %141 {offsets = [0, 48], sizes = [1, 16], strides = [1, 1]} : vector<1x144xf32> to vector<1x16xf32>
    %148 = arith.maximumf %146, %147 : vector<1x16xf32>
    %c6_73 = arith.constant 6 : index
    %c16_74 = arith.constant 16 : index
    %149 = vector.load %arg16[%c6_73, %c16_74] : memref<10x64xf32, #tpu.memory_space<vmem>>, vector<1x16xf32>
    tpu.vector_store %arg16[%c6_73, %c16_74], %148 {strides = array<i32>} : memref<10x64xf32, #tpu.memory_space<vmem>>, vector<1x16xf32>,
    %150 = vector.extract_strided_slice %141 {offsets = [0, 64], sizes = [1, 16], strides = [1, 1]} : vector<1x144xf32> to vector<1x16xf32>
    %151 = vector.extract_strided_slice %141 {offsets = [0, 80], sizes = [1, 16], strides = [1, 1]} : vector<1x144xf32> to vector<1x16xf32>
    %152 = arith.maximumf %150, %151 : vector<1x16xf32>
    %c6_75 = arith.constant 6 : index
    %c32_76 = arith.constant 32 : index
    %153 = vector.load %arg16[%c6_75, %c32_76] : memref<10x64xf32, #tpu.memory_space<vmem>>, vector<1x16xf32>
    tpu.vector_store %arg16[%c6_75, %c32_76], %152 {strides = array<i32>} : memref<10x64xf32, #tpu.memory_space<vmem>>, vector<1x16xf32>,
    %154 = vector.extract_strided_slice %141 {offsets = [0, 96], sizes = [1, 16], strides = [1, 1]} : vector<1x144xf32> to vector<1x16xf32>
    %155 = vector.extract_strided_slice %141 {offsets = [0, 112], sizes = [1, 16], strides = [1, 1]} : vector<1x144xf32> to vector<1x16xf32>
    %156 = arith.maximumf %154, %155 : vector<1x16xf32>
    %c6_77 = arith.constant 6 : index
    %c48_78 = arith.constant 48 : index
    %157 = vector.load %arg16[%c6_77, %c48_78] : memref<10x64xf32, #tpu.memory_space<vmem>>, vector<1x16xf32>
    tpu.vector_store %arg16[%c6_77, %c48_78], %156 {strides = array<i32>} : memref<10x64xf32, #tpu.memory_space<vmem>>, vector<1x16xf32>,
    %158 = vector.extract_strided_slice %43 {offsets = [12, 0], sizes = [1, 144], strides = [1, 1]} : vector<16x144xf32> to vector<1x144xf32>
    %159 = vector.extract_strided_slice %43 {offsets = [13, 0], sizes = [1, 144], strides = [1, 1]} : vector<16x144xf32> to vector<1x144xf32>
    %160 = arith.maximumf %158, %159 : vector<1x144xf32>
    %161 = vector.extract_strided_slice %160 {offsets = [0, 0], sizes = [1, 16], strides = [1, 1]} : vector<1x144xf32> to vector<1x16xf32>
    %162 = vector.extract_strided_slice %160 {offsets = [0, 16], sizes = [1, 16], strides = [1, 1]} : vector<1x144xf32> to vector<1x16xf32>
    %163 = arith.maximumf %161, %162 : vector<1x16xf32>
    %c7 = arith.constant 7 : index
    %c0_79 = arith.constant 0 : index
    %164 = vector.load %arg16[%c7, %c0_79] : memref<10x64xf32, #tpu.memory_space<vmem>>, vector<1x16xf32>
    tpu.vector_store %arg16[%c7, %c0_79], %163 {strides = array<i32>} : memref<10x64xf32, #tpu.memory_space<vmem>>, vector<1x16xf32>,
    %165 = vector.extract_strided_slice %160 {offsets = [0, 32], sizes = [1, 16], strides = [1, 1]} : vector<1x144xf32> to vector<1x16xf32>
    %166 = vector.extract_strided_slice %160 {offsets = [0, 48], sizes = [1, 16], strides = [1, 1]} : vector<1x144xf32> to vector<1x16xf32>
    %167 = arith.maximumf %165, %166 : vector<1x16xf32>
    %c7_80 = arith.constant 7 : index
    %c16_81 = arith.constant 16 : index
    %168 = vector.load %arg16[%c7_80, %c16_81] : memref<10x64xf32, #tpu.memory_space<vmem>>, vector<1x16xf32>
    tpu.vector_store %arg16[%c7_80, %c16_81], %167 {strides = array<i32>} : memref<10x64xf32, #tpu.memory_space<vmem>>, vector<1x16xf32>,
    %169 = vector.extract_strided_slice %160 {offsets = [0, 64], sizes = [1, 16], strides = [1, 1]} : vector<1x144xf32> to vector<1x16xf32>
    %170 = vector.extract_strided_slice %160 {offsets = [0, 80], sizes = [1, 16], strides = [1, 1]} : vector<1x144xf32> to vector<1x16xf32>
    %171 = arith.maximumf %169, %170 : vector<1x16xf32>
    %c7_82 = arith.constant 7 : index
    %c32_83 = arith.constant 32 : index
    %172 = vector.load %arg16[%c7_82, %c32_83] : memref<10x64xf32, #tpu.memory_space<vmem>>, vector<1x16xf32>
    tpu.vector_store %arg16[%c7_82, %c32_83], %171 {strides = array<i32>} : memref<10x64xf32, #tpu.memory_space<vmem>>, vector<1x16xf32>,
    %173 = vector.extract_strided_slice %160 {offsets = [0, 96], sizes = [1, 16], strides = [1, 1]} : vector<1x144xf32> to vector<1x16xf32>
    %174 = vector.extract_strided_slice %160 {offsets = [0, 112], sizes = [1, 16], strides = [1, 1]} : vector<1x144xf32> to vector<1x16xf32>
    %175 = arith.maximumf %173, %174 : vector<1x16xf32>
    %c7_84 = arith.constant 7 : index
    %c48_85 = arith.constant 48 : index
    %176 = vector.load %arg16[%c7_84, %c48_85] : memref<10x64xf32, #tpu.memory_space<vmem>>, vector<1x16xf32>
    tpu.vector_store %arg16[%c7_84, %c48_85], %175 {strides = array<i32>} : memref<10x64xf32, #tpu.memory_space<vmem>>, vector<1x16xf32>,
    %177 = vector.extract_strided_slice %43 {offsets = [14, 0], sizes = [1, 144], strides = [1, 1]} : vector<16x144xf32> to vector<1x144xf32>
    %178 = vector.extract_strided_slice %43 {offsets = [15, 0], sizes = [1, 144], strides = [1, 1]} : vector<16x144xf32> to vector<1x144xf32>
    %179 = arith.maximumf %177, %178 : vector<1x144xf32>
    %180 = vector.extract_strided_slice %179 {offsets = [0, 0], sizes = [1, 16], strides = [1, 1]} : vector<1x144xf32> to vector<1x16xf32>
    %181 = vector.extract_strided_slice %179 {offsets = [0, 16], sizes = [1, 16], strides = [1, 1]} : vector<1x144xf32> to vector<1x16xf32>
    %182 = arith.maximumf %180, %181 : vector<1x16xf32>
    %c8 = arith.constant 8 : index
    %c0_86 = arith.constant 0 : index
    %183 = vector.load %arg16[%c8, %c0_86] : memref<10x64xf32, #tpu.memory_space<vmem>>, vector<1x16xf32>
    tpu.vector_store %arg16[%c8, %c0_86], %182 {strides = array<i32>} : memref<10x64xf32, #tpu.memory_space<vmem>>, vector<1x16xf32>,
    %184 = vector.extract_strided_slice %179 {offsets = [0, 32], sizes = [1, 16], strides = [1, 1]} : vector<1x144xf32> to vector<1x16xf32>
    %185 = vector.extract_strided_slice %179 {offsets = [0, 48], sizes = [1, 16], strides = [1, 1]} : vector<1x144xf32> to vector<1x16xf32>
    %186 = arith.maximumf %184, %185 : vector<1x16xf32>
    %c8_87 = arith.constant 8 : index
    %c16_88 = arith.constant 16 : index
    %187 = vector.load %arg16[%c8_87, %c16_88] : memref<10x64xf32, #tpu.memory_space<vmem>>, vector<1x16xf32>
    tpu.vector_store %arg16[%c8_87, %c16_88], %186 {strides = array<i32>} : memref<10x64xf32, #tpu.memory_space<vmem>>, vector<1x16xf32>,
    %188 = vector.extract_strided_slice %179 {offsets = [0, 64], sizes = [1, 16], strides = [1, 1]} : vector<1x144xf32> to vector<1x16xf32>
    %189 = vector.extract_strided_slice %179 {offsets = [0, 80], sizes = [1, 16], strides = [1, 1]} : vector<1x144xf32> to vector<1x16xf32>
    %190 = arith.maximumf %188, %189 : vector<1x16xf32>
    %c8_89 = arith.constant 8 : index
    %c32_90 = arith.constant 32 : index
    %191 = vector.load %arg16[%c8_89, %c32_90] : memref<10x64xf32, #tpu.memory_space<vmem>>, vector<1x16xf32>
    tpu.vector_store %arg16[%c8_89, %c32_90], %190 {strides = array<i32>} : memref<10x64xf32, #tpu.memory_space<vmem>>, vector<1x16xf32>,
    %192 = vector.extract_strided_slice %179 {offsets = [0, 96], sizes = [1, 16], strides = [1, 1]} : vector<1x144xf32> to vector<1x16xf32>
    %193 = vector.extract_strided_slice %179 {offsets = [0, 112], sizes = [1, 16], strides = [1, 1]} : vector<1x144xf32> to vector<1x16xf32>
    %194 = arith.maximumf %192, %193 : vector<1x16xf32>
    %c8_91 = arith.constant 8 : index
    %c48_92 = arith.constant 48 : index
    %195 = vector.load %arg16[%c8_91, %c48_92] : memref<10x64xf32, #tpu.memory_space<vmem>>, vector<1x16xf32>
    tpu.vector_store %arg16[%c8_91, %c48_92], %194 {strides = array<i32>} : memref<10x64xf32, #tpu.memory_space<vmem>>, vector<1x16xf32>,
    %c0_93 = arith.constant 0 : index
    %c0_94 = arith.constant 0 : index
    %196 = vector.load %arg16[%c0_93, %c0_94] : memref<10x64xf32, #tpu.memory_space<vmem>>, vector<8x64xf32>
    %c0_95 = arith.constant 0 : index
    %c0_96 = arith.constant 0 : index
    %c0_97 = arith.constant 0 : index
    %197 = vector.load %arg6[%c0_95, %c0_96, %c0_97] : memref<3x64x128xf32, #tpu.memory_space<vmem>>, vector<1x64x128xf32>
    %198 = vector.shape_cast %197 : vector<1x64x128xf32> to vector<64x128xf32>
    %cst_98 = arith.constant dense<0.000000e+00> : vector<8x128xf32>
    %199 = tpu.matmul %196, %198, %cst_98 {dimension_numbers = #tpu.dot_dimension_numbers<[1], [0], [0], [1], [0, 0, 1, 1], [], []>} : vector<8x64xf32>, vector<64x128xf32>, vector<8x128xf32> -> vector<8x128xf32>
    %c1_99 = arith.constant 1 : index
    %c0_100 = arith.constant 0 : index
    %200 = vector.load %arg16[%c1_99, %c0_100] : memref<10x64xf32, #tpu.memory_space<vmem>>, vector<8x64xf32>
    %c1_101 = arith.constant 1 : index
    %c0_102 = arith.constant 0 : index
    %c0_103 = arith.constant 0 : index
    %201 = vector.load %arg6[%c1_101, %c0_102, %c0_103] : memref<3x64x128xf32, #tpu.memory_space<vmem>>, vector<1x64x128xf32>
    %202 = vector.shape_cast %201 : vector<1x64x128xf32> to vector<64x128xf32>
    %cst_104 = arith.constant dense<0.000000e+00> : vector<8x128xf32>
    %203 = tpu.matmul %200, %202, %cst_104 {dimension_numbers = #tpu.dot_dimension_numbers<[1], [0], [0], [1], [0, 0, 1, 1], [], []>} : vector<8x64xf32>, vector<64x128xf32>, vector<8x128xf32> -> vector<8x128xf32>
    %204 = arith.addf %199, %203 : vector<8x128xf32>
    %c2_105 = arith.constant 2 : index
    %c0_106 = arith.constant 0 : index
    %205 = vector.load %arg16[%c2_105, %c0_106] : memref<10x64xf32, #tpu.memory_space<vmem>>, vector<8x64xf32>
    %c2_107 = arith.constant 2 : index
    %c0_108 = arith.constant 0 : index
    %c0_109 = arith.constant 0 : index
    %206 = vector.load %arg6[%c2_107, %c0_108, %c0_109] : memref<3x64x128xf32, #tpu.memory_space<vmem>>, vector<1x64x128xf32>
    %207 = vector.shape_cast %206 : vector<1x64x128xf32> to vector<64x128xf32>
    %cst_110 = arith.constant dense<0.000000e+00> : vector<8x128xf32>
    %208 = tpu.matmul %205, %207, %cst_110 {dimension_numbers = #tpu.dot_dimension_numbers<[1], [0], [0], [1], [0, 0, 1, 1], [], []>} : vector<8x64xf32>, vector<64x128xf32>, vector<8x128xf32> -> vector<8x128xf32>
    %209 = arith.addf %204, %208 : vector<8x128xf32>
    %c0_111 = arith.constant 0 : index
    %c0_112 = arith.constant 0 : index
    %210 = vector.load %arg7[%c0_111, %c0_112] : memref<1x128xf32, #tpu.memory_space<vmem>>, vector<1x128xf32>
    %211 = vector.broadcast %210 : vector<1x128xf32> to vector<8x128xf32>
    %212 = arith.mulf %209, %211 : vector<8x128xf32>
    %c0_113 = arith.constant 0 : index
    %c0_114 = arith.constant 0 : index
    %213 = vector.load %arg8[%c0_113, %c0_114] : memref<1x128xf32, #tpu.memory_space<vmem>>, vector<1x128xf32>
    %214 = vector.broadcast %213 : vector<1x128xf32> to vector<8x128xf32>
    %215 = arith.addf %212, %214 : vector<8x128xf32>
    %cst_115 = arith.constant 0.000000e+00 : f32
    %216 = vector.broadcast %cst_115 : f32 to vector<8x128xf32>
    %217 = arith.maximumf %215, %216 : vector<8x128xf32>
    %218 = vector.extract_strided_slice %217 {offsets = [0, 0], sizes = [1, 128], strides = [1, 1]} : vector<8x128xf32> to vector<1x128xf32>
    %219 = vector.extract_strided_slice %217 {offsets = [1, 0], sizes = [1, 128], strides = [1, 1]} : vector<8x128xf32> to vector<1x128xf32>
    %220 = arith.maximumf %218, %219 : vector<1x128xf32>
    %221 = vector.extract_strided_slice %220 {offsets = [0, 0], sizes = [1, 32], strides = [1, 1]} : vector<1x128xf32> to vector<1x32xf32>
    %222 = vector.extract_strided_slice %220 {offsets = [0, 32], sizes = [1, 32], strides = [1, 1]} : vector<1x128xf32> to vector<1x32xf32>
    %223 = arith.maximumf %221, %222 : vector<1x32xf32>
    %c1_116 = arith.constant 1 : index
    %c0_117 = arith.constant 0 : index
    %224 = vector.load %arg17[%c1_116, %c0_117] : memref<6x64xf32, #tpu.memory_space<vmem>>, vector<1x32xf32>
    tpu.vector_store %arg17[%c1_116, %c0_117], %223 {strides = array<i32>} : memref<6x64xf32, #tpu.memory_space<vmem>>, vector<1x32xf32>,
    %225 = vector.extract_strided_slice %220 {offsets = [0, 64], sizes = [1, 32], strides = [1, 1]} : vector<1x128xf32> to vector<1x32xf32>
    %226 = vector.extract_strided_slice %220 {offsets = [0, 96], sizes = [1, 32], strides = [1, 1]} : vector<1x128xf32> to vector<1x32xf32>
    %227 = arith.maximumf %225, %226 : vector<1x32xf32>
    %c1_118 = arith.constant 1 : index
    %c32_119 = arith.constant 32 : index
    %228 = vector.load %arg17[%c1_118, %c32_119] : memref<6x64xf32, #tpu.memory_space<vmem>>, vector<1x32xf32>
    tpu.vector_store %arg17[%c1_118, %c32_119], %227 {strides = array<i32>} : memref<6x64xf32, #tpu.memory_space<vmem>>, vector<1x32xf32>,
    %229 = vector.extract_strided_slice %217 {offsets = [2, 0], sizes = [1, 128], strides = [1, 1]} : vector<8x128xf32> to vector<1x128xf32>
    %230 = vector.extract_strided_slice %217 {offsets = [3, 0], sizes = [1, 128], strides = [1, 1]} : vector<8x128xf32> to vector<1x128xf32>
    %231 = arith.maximumf %229, %230 : vector<1x128xf32>
    %232 = vector.extract_strided_slice %231 {offsets = [0, 0], sizes = [1, 32], strides = [1, 1]} : vector<1x128xf32> to vector<1x32xf32>
    %233 = vector.extract_strided_slice %231 {offsets = [0, 32], sizes = [1, 32], strides = [1, 1]} : vector<1x128xf32> to vector<1x32xf32>
    %234 = arith.maximumf %232, %233 : vector<1x32xf32>
    %c2_120 = arith.constant 2 : index
    %c0_121 = arith.constant 0 : index
    %235 = vector.load %arg17[%c2_120, %c0_121] : memref<6x64xf32, #tpu.memory_space<vmem>>, vector<1x32xf32>
    tpu.vector_store %arg17[%c2_120, %c0_121], %234 {strides = array<i32>} : memref<6x64xf32, #tpu.memory_space<vmem>>, vector<1x32xf32>,
    %236 = vector.extract_strided_slice %231 {offsets = [0, 64], sizes = [1, 32], strides = [1, 1]} : vector<1x128xf32> to vector<1x32xf32>
    %237 = vector.extract_strided_slice %231 {offsets = [0, 96], sizes = [1, 32], strides = [1, 1]} : vector<1x128xf32> to vector<1x32xf32>
    %238 = arith.maximumf %236, %237 : vector<1x32xf32>
    %c2_122 = arith.constant 2 : index
    %c32_123 = arith.constant 32 : index
    %239 = vector.load %arg17[%c2_122, %c32_123] : memref<6x64xf32, #tpu.memory_space<vmem>>, vector<1x32xf32>
    tpu.vector_store %arg17[%c2_122, %c32_123], %238 {strides = array<i32>} : memref<6x64xf32, #tpu.memory_space<vmem>>, vector<1x32xf32>,
    %240 = vector.extract_strided_slice %217 {offsets = [4, 0], sizes = [1, 128], strides = [1, 1]} : vector<8x128xf32> to vector<1x128xf32>
    %241 = vector.extract_strided_slice %217 {offsets = [5, 0], sizes = [1, 128], strides = [1, 1]} : vector<8x128xf32> to vector<1x128xf32>
    %242 = arith.maximumf %240, %241 : vector<1x128xf32>
    %243 = vector.extract_strided_slice %242 {offsets = [0, 0], sizes = [1, 32], strides = [1, 1]} : vector<1x128xf32> to vector<1x32xf32>
    %244 = vector.extract_strided_slice %242 {offsets = [0, 32], sizes = [1, 32], strides = [1, 1]} : vector<1x128xf32> to vector<1x32xf32>
    %245 = arith.maximumf %243, %244 : vector<1x32xf32>
    %c3_124 = arith.constant 3 : index
    %c0_125 = arith.constant 0 : index
    %246 = vector.load %arg17[%c3_124, %c0_125] : memref<6x64xf32, #tpu.memory_space<vmem>>, vector<1x32xf32>
    tpu.vector_store %arg17[%c3_124, %c0_125], %245 {strides = array<i32>} : memref<6x64xf32, #tpu.memory_space<vmem>>, vector<1x32xf32>,
    %247 = vector.extract_strided_slice %242 {offsets = [0, 64], sizes = [1, 32], strides = [1, 1]} : vector<1x128xf32> to vector<1x32xf32>
    %248 = vector.extract_strided_slice %242 {offsets = [0, 96], sizes = [1, 32], strides = [1, 1]} : vector<1x128xf32> to vector<1x32xf32>
    %249 = arith.maximumf %247, %248 : vector<1x32xf32>
    %c3_126 = arith.constant 3 : index
    %c32_127 = arith.constant 32 : index
    %250 = vector.load %arg17[%c3_126, %c32_127] : memref<6x64xf32, #tpu.memory_space<vmem>>, vector<1x32xf32>
    tpu.vector_store %arg17[%c3_126, %c32_127], %249 {strides = array<i32>} : memref<6x64xf32, #tpu.memory_space<vmem>>, vector<1x32xf32>,
    %251 = vector.extract_strided_slice %217 {offsets = [6, 0], sizes = [1, 128], strides = [1, 1]} : vector<8x128xf32> to vector<1x128xf32>
    %252 = vector.extract_strided_slice %217 {offsets = [7, 0], sizes = [1, 128], strides = [1, 1]} : vector<8x128xf32> to vector<1x128xf32>
    %253 = arith.maximumf %251, %252 : vector<1x128xf32>
    %254 = vector.extract_strided_slice %253 {offsets = [0, 0], sizes = [1, 32], strides = [1, 1]} : vector<1x128xf32> to vector<1x32xf32>
    %255 = vector.extract_strided_slice %253 {offsets = [0, 32], sizes = [1, 32], strides = [1, 1]} : vector<1x128xf32> to vector<1x32xf32>
    %256 = arith.maximumf %254, %255 : vector<1x32xf32>
    %c4_128 = arith.constant 4 : index
    %c0_129 = arith.constant 0 : index
    %257 = vector.load %arg17[%c4_128, %c0_129] : memref<6x64xf32, #tpu.memory_space<vmem>>, vector<1x32xf32>
    tpu.vector_store %arg17[%c4_128, %c0_129], %256 {strides = array<i32>} : memref<6x64xf32, #tpu.memory_space<vmem>>, vector<1x32xf32>,
    %258 = vector.extract_strided_slice %253 {offsets = [0, 64], sizes = [1, 32], strides = [1, 1]} : vector<1x128xf32> to vector<1x32xf32>
    %259 = vector.extract_strided_slice %253 {offsets = [0, 96], sizes = [1, 32], strides = [1, 1]} : vector<1x128xf32> to vector<1x32xf32>
    %260 = arith.maximumf %258, %259 : vector<1x32xf32>
    %c4_130 = arith.constant 4 : index
    %c32_131 = arith.constant 32 : index
    %261 = vector.load %arg17[%c4_130, %c32_131] : memref<6x64xf32, #tpu.memory_space<vmem>>, vector<1x32xf32>
    tpu.vector_store %arg17[%c4_130, %c32_131], %260 {strides = array<i32>} : memref<6x64xf32, #tpu.memory_space<vmem>>, vector<1x32xf32>,
    %c0_132 = arith.constant 0 : index
    %c0_133 = arith.constant 0 : index
    %262 = vector.load %arg17[%c0_132, %c0_133] : memref<6x64xf32, #tpu.memory_space<vmem>>, vector<4x64xf32>
    %c0_134 = arith.constant 0 : index
    %c0_135 = arith.constant 0 : index
    %c0_136 = arith.constant 0 : index
    %263 = vector.load %arg9[%c0_134, %c0_135, %c0_136] : memref<3x64x128xf32, #tpu.memory_space<vmem>>, vector<1x64x128xf32>
    %264 = vector.shape_cast %263 : vector<1x64x128xf32> to vector<64x128xf32>
    %cst_137 = arith.constant dense<0.000000e+00> : vector<4x128xf32>
    %265 = tpu.matmul %262, %264, %cst_137 {dimension_numbers = #tpu.dot_dimension_numbers<[1], [0], [0], [1], [0, 0, 1, 1], [], []>} : vector<4x64xf32>, vector<64x128xf32>, vector<4x128xf32> -> vector<4x128xf32>
    %c1_138 = arith.constant 1 : index
    %c0_139 = arith.constant 0 : index
    %266 = vector.load %arg17[%c1_138, %c0_139] : memref<6x64xf32, #tpu.memory_space<vmem>>, vector<4x64xf32>
    %c1_140 = arith.constant 1 : index
    %c0_141 = arith.constant 0 : index
    %c0_142 = arith.constant 0 : index
    %267 = vector.load %arg9[%c1_140, %c0_141, %c0_142] : memref<3x64x128xf32, #tpu.memory_space<vmem>>, vector<1x64x128xf32>
    %268 = vector.shape_cast %267 : vector<1x64x128xf32> to vector<64x128xf32>
    %cst_143 = arith.constant dense<0.000000e+00> : vector<4x128xf32>
    %269 = tpu.matmul %266, %268, %cst_143 {dimension_numbers = #tpu.dot_dimension_numbers<[1], [0], [0], [1], [0, 0, 1, 1], [], []>} : vector<4x64xf32>, vector<64x128xf32>, vector<4x128xf32> -> vector<4x128xf32>
    %270 = arith.addf %265, %269 : vector<4x128xf32>
    %c2_144 = arith.constant 2 : index
    %c0_145 = arith.constant 0 : index
    %271 = vector.load %arg17[%c2_144, %c0_145] : memref<6x64xf32, #tpu.memory_space<vmem>>, vector<4x64xf32>
    %c2_146 = arith.constant 2 : index
    %c0_147 = arith.constant 0 : index
    %c0_148 = arith.constant 0 : index
    %272 = vector.load %arg9[%c2_146, %c0_147, %c0_148] : memref<3x64x128xf32, #tpu.memory_space<vmem>>, vector<1x64x128xf32>
    %273 = vector.shape_cast %272 : vector<1x64x128xf32> to vector<64x128xf32>
    %cst_149 = arith.constant dense<0.000000e+00> : vector<4x128xf32>
    %274 = tpu.matmul %271, %273, %cst_149 {dimension_numbers = #tpu.dot_dimension_numbers<[1], [0], [0], [1], [0, 0, 1, 1], [], []>} : vector<4x64xf32>, vector<64x128xf32>, vector<4x128xf32> -> vector<4x128xf32>
    %275 = arith.addf %270, %274 : vector<4x128xf32>
    %c0_150 = arith.constant 0 : index
    %c0_151 = arith.constant 0 : index
    %276 = vector.load %arg10[%c0_150, %c0_151] : memref<1x128xf32, #tpu.memory_space<vmem>>, vector<1x128xf32>
    %277 = vector.broadcast %276 : vector<1x128xf32> to vector<4x128xf32>
    %278 = arith.mulf %275, %277 : vector<4x128xf32>
    %c0_152 = arith.constant 0 : index
    %c0_153 = arith.constant 0 : index
    %279 = vector.load %arg11[%c0_152, %c0_153] : memref<1x128xf32, #tpu.memory_space<vmem>>, vector<1x128xf32>
    %280 = vector.broadcast %279 : vector<1x128xf32> to vector<4x128xf32>
    %281 = arith.addf %278, %280 : vector<4x128xf32>
    %cst_154 = arith.constant 0.000000e+00 : f32
    %282 = vector.broadcast %cst_154 : f32 to vector<4x128xf32>
    %283 = arith.maximumf %281, %282 : vector<4x128xf32>
    %284 = vector.extract_strided_slice %283 {offsets = [0, 0], sizes = [1, 128], strides = [1, 1]} : vector<4x128xf32> to vector<1x128xf32>
    %285 = vector.extract_strided_slice %283 {offsets = [1, 0], sizes = [1, 128], strides = [1, 1]} : vector<4x128xf32> to vector<1x128xf32>
    %286 = arith.maximumf %284, %285 : vector<1x128xf32>
    %287 = vector.extract_strided_slice %286 {offsets = [0, 0], sizes = [1, 64], strides = [1, 1]} : vector<1x128xf32> to vector<1x64xf32>
    %288 = vector.extract_strided_slice %286 {offsets = [0, 64], sizes = [1, 64], strides = [1, 1]} : vector<1x128xf32> to vector<1x64xf32>
    %289 = arith.maximumf %287, %288 : vector<1x64xf32>
    %290 = vector.extract_strided_slice %283 {offsets = [2, 0], sizes = [1, 128], strides = [1, 1]} : vector<4x128xf32> to vector<1x128xf32>
    %291 = vector.extract_strided_slice %283 {offsets = [3, 0], sizes = [1, 128], strides = [1, 1]} : vector<4x128xf32> to vector<1x128xf32>
    %292 = arith.maximumf %290, %291 : vector<1x128xf32>
    %293 = vector.extract_strided_slice %292 {offsets = [0, 0], sizes = [1, 64], strides = [1, 1]} : vector<1x128xf32> to vector<1x64xf32>
    %294 = vector.extract_strided_slice %292 {offsets = [0, 64], sizes = [1, 64], strides = [1, 1]} : vector<1x128xf32> to vector<1x64xf32>
    %295 = arith.maximumf %293, %294 : vector<1x64xf32>
    %296 = arith.addf %289, %295 : vector<1x64xf32>
    %cst_155 = arith.constant 5.000000e-01 : f32
    %297 = vector.broadcast %cst_155 : f32 to vector<1x64xf32>
    %298 = arith.mulf %296, %297 : vector<1x64xf32>
    %c0_156 = arith.constant 0 : index
    %c0_157 = arith.constant 0 : index
    %299 = vector.load %arg12[%c0_156, %c0_157] : memref<64x5xf32, #tpu.memory_space<vmem>>, vector<64x5xf32>
    %cst_158 = arith.constant dense<0.000000e+00> : vector<1x5xf32>
    %300 = tpu.matmul %298, %299, %cst_158 {dimension_numbers = #tpu.dot_dimension_numbers<[1], [0], [0], [1], [0, 0, 1, 1], [], []>} : vector<1x64xf32>, vector<64x5xf32>, vector<1x5xf32> -> vector<1x5xf32>
    %c0_159 = arith.constant 0 : index
    %c0_160 = arith.constant 0 : index
    %301 = vector.load %arg13[%c0_159, %c0_160] : memref<1x5xf32, #tpu.memory_space<vmem>>, vector<1x5xf32>
    %302 = arith.addf %300, %301 : vector<1x5xf32>
    %c0_161 = arith.constant 0 : index
    %c0_162 = arith.constant 0 : index
    %c0_163 = arith.constant 0 : index
    %303 = vector.load %arg14[%c0_161, %c0_162, %c0_163] : memref<1x1x5xf32, #tpu.memory_space<vmem>>, vector<1x1x5xf32>
    %304 = vector.shape_cast %303 : vector<1x1x5xf32> to vector<1x5xf32>
    %305 = vector.shape_cast %302 : vector<1x5xf32> to vector<1x1x5xf32>
    tpu.vector_store %arg14[%c0_161, %c0_162, %c0_163], %305 {strides = array<i32>} : memref<1x1x5xf32, #tpu.memory_space<vmem>>, vector<1x1x5xf32>,
    return
  }
  func.func @transform_0(%arg0: i32) -> (i32, i32, i32) {
    %c0_i32 = arith.constant 0 : i32
    %c0_i32_0 = arith.constant 0 : i32
    %c0_i32_1 = arith.constant 0 : i32
    return %arg0, %c0_i32, %c0_i32_0 : i32, i32, i32
  }
  func.func @transform_1(%arg0: i32) -> (i32, i32) {
    %c0_i32 = arith.constant 0 : i32
    %c0_i32_0 = arith.constant 0 : i32
    %c0_i32_1 = arith.constant 0 : i32
    return %c0_i32, %c0_i32_0 : i32, i32
  }
  func.func @transform_2(%arg0: i32) -> (i32, i32, i32) {
    %c0_i32 = arith.constant 0 : i32
    %c0_i32_0 = arith.constant 0 : i32
    %c0_i32_1 = arith.constant 0 : i32
    %c0_i32_2 = arith.constant 0 : i32
    return %c0_i32, %c0_i32_0, %c0_i32_1 : i32, i32, i32
  }
  func.func @transform_3(%arg0: i32) -> (i32, i32) {
    %c0_i32 = arith.constant 0 : i32
    %c0_i32_0 = arith.constant 0 : i32
    %c0_i32_1 = arith.constant 0 : i32
    return %c0_i32, %c0_i32_0 : i32, i32
  }
  func.func @transform_4(%arg0: i32) -> (i32, i32) {
    %c0_i32 = arith.constant 0 : i32
    %c0_i32_0 = arith.constant 0 : i32
    %c0_i32_1 = arith.constant 0 : i32
    return %c0_i32, %c0_i32_0 : i32, i32
  }
  func.func @transform_5(%arg0: i32) -> (i32, i32, i32) {
    %c0_i32 = arith.constant 0 : i32
    %c0_i32_0 = arith.constant 0 : i32
    %c0_i32_1 = arith.constant 0 : i32
    %c0_i32_2 = arith.constant 0 : i32
    return %c0_i32, %c0_i32_0, %c0_i32_1 : i32, i32, i32
  }
  func.func @transform_6(%arg0: i32) -> (i32, i32) {
    %c0_i32 = arith.constant 0 : i32
    %c0_i32_0 = arith.constant 0 : i32
    %c0_i32_1 = arith.constant 0 : i32
    return %c0_i32, %c0_i32_0 : i32, i32
  }
  func.func @transform_7(%arg0: i32) -> (i32, i32) {
    %c0_i32 = arith.constant 0 : i32
    %c0_i32_0 = arith.constant 0 : i32
    %c0_i32_1 = arith.constant 0 : i32
    return %c0_i32, %c0_i32_0 : i32, i32
  }
  func.func @transform_8(%arg0: i32) -> (i32, i32, i32) {
    %c0_i32 = arith.constant 0 : i32
    %c0_i32_0 = arith.constant 0 : i32
    %c0_i32_1 = arith.constant 0 : i32
    %c0_i32_2 = arith.constant 0 : i32
    return %c0_i32, %c0_i32_0, %c0_i32_1 : i32, i32, i32
  }
  func.func @transform_9(%arg0: i32) -> (i32, i32) {
    %c0_i32 = arith.constant 0 : i32
    %c0_i32_0 = arith.constant 0 : i32
    %c0_i32_1 = arith.constant 0 : i32
    return %c0_i32, %c0_i32_0 : i32, i32
  }
  func.func @transform_10(%arg0: i32) -> (i32, i32) {
    %c0_i32 = arith.constant 0 : i32
    %c0_i32_0 = arith.constant 0 : i32
    %c0_i32_1 = arith.constant 0 : i32
    return %c0_i32, %c0_i32_0 : i32, i32
  }
  func.func @transform_11(%arg0: i32) -> (i32, i32) {
    %c0_i32 = arith.constant 0 : i32
    %c0_i32_0 = arith.constant 0 : i32
    %c0_i32_1 = arith.constant 0 : i32
    return %c0_i32, %c0_i32_0 : i32, i32
  }
  func.func @transform_12(%arg0: i32) -> (i32, i32) {
    %c0_i32 = arith.constant 0 : i32
    %c0_i32_0 = arith.constant 0 : i32
    %c0_i32_1 = arith.constant 0 : i32
    return %c0_i32, %c0_i32_0 : i32, i32
  }
  func.func @transform_13(%arg0: i32) -> (i32, i32, i32) {
    %c0_i32 = arith.constant 0 : i32
    %c0_i32_0 = arith.constant 0 : i32
    %c0_i32_1 = arith.constant 0 : i32
    return %arg0, %c0_i32, %c0_i32_0 : i32, i32, i32
  }
}

</mosaic_0001>

<bundles_post_ra>
// kernel: tpu_custom_call.1
= control target key start
LH: loop header
LB: loop body
LE: loop exit
PB: predicated region body
PF: predicated region fallthrough
CT: control target
= control target key end

     0   :  { %s3042_s0 = inlined_call_operand.hbm [shape: f32[2,16,64], index: 0, kind: input, shape index: {}]   ;;  %s3043_s1 = inlined_call_operand.vmem [shape: f32[64,72], index: 1, kind: input, shape index: {}]   ;;  %s3044_s2 = inlined_call_operand.hbm [shape: f32[3,36,144], index: 2, kind: input, shape index: {}]   ;;  %s3045_s3 = inlined_call_operand.vmem [shape: f32[1,144], index: 3, kind: input, shape index: {}]   ;;  %s3046_s4 = inlined_call_operand.vmem [shape: f32[1,144], index: 4, kind: input, shape index: {}]   ;;  %s3047_s5 = inlined_call_operand.hbm [shape: f32[3,64,128], index: 5, kind: input, shape index: {}]   ;;  %s3048_s6 = inlined_call_operand.vmem [shape: f32[1,128], index: 6, kind: input, shape index: {}]   ;;  %s3049_s7 = inlined_call_operand.vmem [shape: f32[1,128], index: 7, kind: input, shape index: {}]   ;;  %s3050_s8 = inlined_call_operand.hbm [shape: f32[3,64,128], index: 8, kind: input, shape index: {}]   ;;  %s3051_s9 = inlined_call_operand.vmem [shape: f32[1,128], index: 9, kind: input, shape index: {}]   ;;  %s3052_s10 = inlined_call_operand.vmem [shape: f32[1,128], index: 10, kind: input, shape index: {}]   ;;  %s3053_s11 = inlined_call_operand.vmem [shape: f32[64,5], index: 11, kind: input, shape index: {}]   ;;  %s3054_s12 = inlined_call_operand.vmem [shape: f32[1,5], index: 12, kind: input, shape index: {}]   ;;  %s3055_s13 = inlined_call_operand.hbm [shape: f32[2,1,5], index: 13, kind: output, shape index: {}]  }
   0x1   :  { %3063 = sst [smem:[#allocation20_spill]] %s3044_s2 }
   0x2   :  { %3064 = sst [smem:[#allocation21_spill]] %s3051_s9 }
   0x3   :  { %3065 = sst [smem:[#allocation22_spill]] %s3052_s10 }
   0x4   :  { %3066 = sst [smem:[#allocation23_spill]] %s3053_s11 }
   0x5   :  { %3067 = sst [smem:[#allocation24_spill]] %s3054_s12 }
   0x6   :  { %3068 = sst [smem:[#allocation25_spill]] %s3055_s13 }
   0x7   :  { %18 = vsyncpa [#allocation6], 0 }
   0x8   :  { %20 = vsyncpa [#allocation6 + $0x1], 0 }
   0x9   :  { %21 = vsyncpa [#allocation9], 0 }
   0xa   :  { %22 = vsyncpa [#allocation12], 0 }
   0xb   :  { %23 = vsyncpa [#allocation7], 0 }
   0xc   :  { %25 = vsyncpa [#allocation7 + $0x1], 0  ;;  %s2597_s25 = smov 0   ;;  %s2599_s26 = smov 0  }
   0xd   :  { %s2601_s27 = smov 0   ;;  %s2603_s28 = smov 0  }
   0xe LB: > { %3069 = sst [smem:[#allocation18_spill]] %s2496_s25  ;;  %s2618_s29 = sadd.s32 4294967295, %s2508_s28   ;;  %s2508_s28 = sphi %s2603_s28, %s3098_s28   ;;  %s2504_s27 = sphi %s2601_s27, %s3097_s27   ;;  %s2500_s26 = sphi %s2599_s26, %s3096_s26   ;;  %s2496_s25 = sphi %s2597_s25, %s3095_s25  }
   0xf   : > { %s1815_s30 = sadd.s32 4294967294, %s2508_s28   ;;  %p51_p0 = scmp.ne.s32.totalorder %s2500_s26, %s2496_s25 }
  0x10   : > { %p3058_p1 = scmp.eq.s32.totalorder %s2618_s29, 0  ;;  %p333_p3 = scmp.eq.s32.totalorder %s1815_s30, 1 }
  0x11   : > { %p1816_p5 = scmp.ge.s32.totalorder %s2508_s28, 1  ;;  %p340_p7 = scmp.lt.s32.totalorder %s2508_s28, 3 }
  0x12   : > { %p2627_p4 = por %p3058_p1, %p51_p0  ;;  %p2632_p6 = por %p333_p3, %p51_p0 }
  0x13   : > { %p2637_p8 = pnand %p1816_p5, %p340_p7  ;;  %s2510_s17 = smov [#allocation8]  }
  0x14   : > { %s3070_s14 = scalar_select %p2627_p4, 1, 0 }
  0x15   : > { %s3071_s15 = scalar_select %p2632_p6, 1, 0 }
  0x16   : > { %s3073_s16 = scalar_select %p2637_p8, 1, 0 }
  0x17   : > { %3072 = sst [smem:[#allocation19_spill]] %s3071_s15  ;;  %s355_s18 = sshll.u32 %s2510_s17, 4  ;;  %s2641_s18 = int_to_ptr.vmem [resolvable:$true] %s355_s18 }
  0x18   : > { %p2239_p9 = pneg %p2637_p8  ;;  %s2511_s20 = smov [#allocation10]  }
  0x19   : > { %s374_s21 = sshll.u32 %s2511_s20, 4  ;;  %s3075_s2 = sld [smem:[#allocation20_spill]]  ;;  %s2652_s21 = int_to_ptr.vmem [resolvable:$true] %s374_s21 }
  0x1a   : > { %p2648_p11 = pnand %p2239_p9, %p3058_p1 }
  0x1c   : > { %p2662_p13 = pneg %p2648_p11 }
  0x1f   : > { %s2320_s24 = scalar_lea.hbm %s3075_s2, 3840 }
  0x20   : > { %p2321_p12 = scmp.ne.s32.totalorder %s3075_s2, %s2320_s24  ;;  %p2327_p5 = scmp.lt.u32.totalorder %s2320_s24, %s3075_s2 }
  0x22   : > { %p2323_p0 = pnand %p2662_p13, %p2321_p12 }
  0x24   : > { %p2324_p3 = pneg %p2323_p0 }
  0x26   : > { %p2329_p7 = pnand %p2327_p5, %p2324_p3 }
  0x28   : > { %2332 = shalt.err (!%p2329_p7)
}
  0x29   : > { %s2333_s22 = scalar_lea.vmem %s2641_s18, 3840  ;;  %p2341_p2 = scmp.lt.s32.totalorder %s2641_s18, %s2641_s18 }
  0x2a   : > { %p2334_p9 = scmp.ne.s32.totalorder %s2641_s18, %s2333_s22  ;;  %p2342_p6 = scmp.lt.s32.totalorder %s2333_s22, %s2333_s22 }
  0x2c   : > { %p2336_p10 = pnand %p2334_p9, %p2662_p13  ;;  %p2343_p12 = por %p2342_p6, %p2341_p2 }
  0x2e   : > { %p2337_p1 = pneg %p2336_p10 }
  0x30   : > { %p2344_p0 = pnand %p2343_p12, %p2337_p1 }
  0x32   : > { %2347 = shalt.err (!%p2344_p0)
}
  0x33   : > { %s2512_s23 = smov 256   ;;  %s2513_s25 = smov 16  }
  0x34   : > { %2242 = dma.hbm_to_vmem [thread:$0]  (!%p2648_p11), %s3075_s2, 3840, %s2641_s18, [#allocation9], %s2512_s23, %s2512_s23, %s2513_s25  }
  0x35   : > { %s2348_s13 = scalar_lea.hbm %s3047_s5, 3072 }
  0x36   : > { %p2349_p2 = scmp.ne.s32.totalorder %s3047_s5, %s2348_s13  ;;  %p2355_p10 = scmp.lt.u32.totalorder %s2348_s13, %s3047_s5 }
  0x38   : > { %p2351_p1 = pnand %p2349_p2, %p2662_p13 }
  0x3a   : > { %p2352_p6 = pneg %p2351_p1 }
  0x3c   : > { %p2357_p3 = pnand %p2355_p10, %p2352_p6 }
  0x3e   : > { %2360 = shalt.err (!%p2357_p3)
}
  0x3f   : > { %s2361_s18 = scalar_lea.vmem %s2652_s21, 3072  ;;  %p2369_p12 = scmp.lt.s32.totalorder %s2652_s21, %s2652_s21 }
  0x40   : > { %p2362_p5 = scmp.ne.s32.totalorder %s2652_s21, %s2361_s18  ;;  %p2370_p0 = scmp.lt.s32.totalorder %s2361_s18, %s2361_s18 }
  0x42   : > { %p2364_p7 = pnand %p2362_p5, %p2662_p13  ;;  %p2371_p2 = por %p2370_p0, %p2369_p12 }
  0x44   : > { %p2365_p9 = pneg %p2364_p7 }
  0x46   : > { %p2372_p1 = pnand %p2371_p2, %p2365_p9 }
  0x48   : > { %2375 = shalt.err (!%p2372_p1)
}
  0x49   : > { %s2514_s10 = smov 128   ;;  %s2515_s9 = smov 8  }
  0x4a   : > { %2245 = dma.hbm_to_vmem [thread:$0]  (!%p2648_p11), %s3047_s5, 3072, %s2652_s21, [#allocation9], %s2514_s10, %s2514_s10, %s2515_s9  }
  0x4b   : > { %s2516_s23 = smov [#allocation11]   ;;  %s2710_s24 = sadd.s32 1, %s2508_s28  }
  0x4c   : > { %s393_s25 = sshll.u32 %s2516_s23, 4  ;;  %s2376_s20 = scalar_lea.hbm %s3050_s8, 3072  ;;  %s394_s25 = int_to_ptr.vmem [resolvable:$true] %s393_s25 }
  0x4d   : > { %p2377_p6 = scmp.ne.s32.totalorder %s3050_s8, %s2376_s20  ;;  %p2383_p5 = scmp.lt.u32.totalorder %s2376_s20, %s3050_s8 }
  0x4f   : > { %p2379_p10 = pnand %p2377_p6, %p2662_p13 }
  0x51   : > { %p2380_p3 = pneg %p2379_p10 }
  0x53   : > { %p2385_p7 = pnand %p2383_p5, %p2380_p3 }
  0x55   : > { %2388 = shalt.err (!%p2385_p7)
}
  0x56   : > { %s2389_s21 = scalar_lea.vmem %s394_s25, 3072  ;;  %p2397_p2 = scmp.lt.s32.totalorder %s394_s25, %s394_s25 }
  0x57   : > { %p2390_p9 = scmp.ne.s32.totalorder %s394_s25, %s2389_s21  ;;  %p2398_p1 = scmp.lt.s32.totalorder %s2389_s21, %s2389_s21 }
  0x59   : > { %p2392_p12 = pnand %p2390_p9, %p2662_p13  ;;  %p2399_p4 = por %p2398_p1, %p2397_p2 }
  0x5b   : > { %p2393_p0 = pneg %p2392_p12 }
  0x5d   : > { %p2400_p8 = pnand %p2399_p4, %p2393_p0 }
  0x5f   : > { %2403 = shalt.err (!%p2400_p8)
}
  0x60   : > { %2248 = dma.hbm_to_vmem [thread:$0]  (!%p2648_p11), %s3050_s8, 3072, %s394_s25, [#allocation12], %s2514_s10, %s2514_s10, %s2515_s9  }
  0x61   : > { %s35_s15 = ssub.s32 %s2508_s28, %s2710_s24  ;;  %s38_s19 = sadd.s32 1, %s2504_s27 }
  0x62   : > { %p36_p4 = scmp.eq.s32.totalorder %s35_s15, 0  ;;  %p45_p8 = scmp.ne.s32.totalorder %s2504_s27, %s2500_s26 }
  0x63   : > { %p46_p13 = scmp.eq.s32.totalorder %s2508_s28, 0  ;;  %p2260_p6 = scmp.lt.s32.totalorder %s2508_s28, 2 }
  0x64   : > { %s2741_s12 = scalar_select %p36_p4, %s2504_s27, %s38_s19  }
  0x65   : > { %p47_p10 = por %p46_p13, %p45_p8  ;;  %p3077_p3 = scmp.eq.s32.totalorder %s2618_s29, 1 }
  0x66   : > { %s419_s23 = sand.u32 1, %s2504_s27   ;;  %s1857_s30 = sshll.u32 %s2508_s28, 8 }
  0x67   : > { %p2745_p5 = por %p3077_p3, %p45_p8  ;;  %s1821_s17 = sshll.u32 %s419_s23, 4 }
  0x68   : > { %s2754_s25 = scalar_lea.hbm %s3042_s0, %s1857_s30  ;;  %s423_s18 = scalar_lea.vmem [#allocation5], %s1821_s17 }
  0x69   : > { %s430_s21 = sshll.u32 %s423_s18, 4  ;;  %p2756_p11 = pnand %p2260_p6, %p47_p10  ;;  %s2760_s21 = int_to_ptr.vmem [resolvable:$true] %s430_s21 }
  0x6a   : > { %s2762_s11 = scalar_lea.sflag [#allocation6], %s419_s23  ;;  %s2404_s15 = scalar_lea.hbm %s2754_s25, 256 }
  0x6b   : > { %p2405_p7 = scmp.ne.s32.totalorder %s2754_s25, %s2404_s15  ;;  %p2406_p9 = pneg %p2756_p11 }
  0x6c   : > { %s2409_s17 = scalar_lea.hbm %s3042_s0, 512  ;;  %p2410_p2 = scmp.lt.u32.totalorder %s2754_s25, %s3042_s0 }
  0x6d   : > { %p2407_p12 = pnand %p2406_p9, %p2405_p7  ;;  %p2411_p1 = scmp.lt.u32.totalorder %s2409_s17, %s2404_s15 }
  0x6e   : > { %p2413_p8 = scmp.lt.u32.totalorder %s2404_s15, %s2754_s25 }
  0x6f   : > { %p2408_p0 = pneg %p2407_p12  ;;  %p2412_p4 = por %p2411_p1, %p2410_p2 }
  0x71   : > { %p2414_p13 = por %p2413_p8, %p2412_p4 }
  0x73   : > { %p2415_p6 = pnand %p2414_p13, %p2408_p0 }
  0x75   : > { %2418 = shalt.err (!%p2415_p6)
}
  0x76   : > { %s2419_s23 = scalar_lea.vmem %s2760_s21, 256  ;;  %s2517_s18 = smov [#allocation5]  }
  0x77   : > { %p2420_p10 = scmp.ne.s32.totalorder %s2760_s21, %s2419_s23  ;;  %s2424_s19 = sshll.u32 %s2517_s18, 4  ;;  %s2425_s19 = int_to_ptr.vmem [resolvable:$false] %s2424_s19 }
  0x78   : > { %s2426_s30 = scalar_lea.vmem %s2425_s19, 512  ;;  %p2427_p12 = scmp.lt.s32.totalorder %s2760_s21, %s2425_s19 }
  0x79   : > { %p2422_p3 = pnand %p2420_p10, %p2406_p9  ;;  %p2428_p2 = scmp.lt.s32.totalorder %s2426_s30, %s2419_s23 }
  0x7b   : > { %p2423_p7 = pneg %p2422_p3  ;;  %p2429_p1 = por %p2428_p2, %p2427_p12 }
  0x7d   : > { %p2430_p4 = pnand %p2429_p1, %p2423_p7 }
  0x7f   : > { %2433 = shalt.err (!%p2430_p4)
}
  0x80   : > { %2252 = dma.hbm_to_vmem [thread:$0]  (!%p2756_p11), %s2754_s25, 256, %s2760_s21, %s2762_s11, %s2514_s10, %s2514_s10, %s2515_s9  }
  0x81   : > { %p3080_p9 = scmp.ne.s32.totalorder %s3073_s16, 0 }
  0x82   : > { %s2796_s15 = sand.u32 (!%p3080_p9), 1, %s2500_s26   ;;  %p3081_p0 = scmp.ne.s32.totalorder (!%p3080_p9), %s3070_s14, 0 }
  0x83   : > { %442 = sbr.rel (%p3080_p9) target bundleno = 2143 (0x85f), region = 72  ;;  %s1825_s17 = sshll.u32 (!%p3080_p9), %s2796_s15, 4 }
  0x84   : > { %s445_s20 = scalar_lea.sflag (!%p3080_p9), [#allocation6], %s2796_s15  ;;  %s448_s22 = scalar_lea.vmem (!%p3080_p9), [#allocation5], %s1825_s17 }
  0x8a   : > { %2479 = dma.done.wait (%p3081_p0), %s445_s20, 256  }
  0x8b   : > { %2481 = vsyncadd (%p3081_p0), %s445_s20, 4294967040  ;;  %p3082_p8 = scmp.eq.s32.totalorder %s2618_s29, 0 }
  0x8d   : > { %2483 = dma.done.wait (%p3082_p8), [#allocation9], 6912   ;;  %p3083_p11 = pmov %p3082_p8 }
  0x8e   : > { %p3084_p13 = pmov %p3082_p8 }
  0x8f   : > { %2485 = vsyncadd (%p3083_p11), [#allocation9], 4294960384 }
  0x90   : > { %2487 = dma.done.wait (%p3084_p13), [#allocation12], 3072   ;;  %p3085_p6 = pmov %p3082_p8 }
  0x91   : > { %v515_v0 = vld [vmem:[%s3043_s1] sm:$0xff]  ;;  %v516_v1 = vld [vmem:[%s3043_s1 + $0x8] sm:$0xff]  ;;  %v517_v2 = vld [vmem:[%s3043_s1 + $0x10] sm:$0xff]  ;;  %vm507_vm0 = vcmask 523264   ;;  %s2518_s9 = smov 92   ;;  %vm502_vm1 = vcmask 293888  }
  0x92   : > { %2489 = vsyncadd (%p3085_p6), [#allocation12], 4294964224  ;;  %v2083_v3 = vpack.c.bf16 %v516_v1, %v515_v0  ;;  %v518_v4 = vld [vmem:[%s3043_s1 + $0x18] sm:$0xff]  ;;  %v519_v6 = vld [vmem:[%s3043_s1 + $0x20] sm:$0xff]  ;;  %v2519_v29 = vmov 0.0   ;;  %vm671_vm2 = vcmask 1043456  }
  0x93   : > { %v2087_v5 = vpack.c.bf16 %v518_v4, %v517_v2  ;;  %v520_v7 = vld [vmem:[%s3043_s1 + $0x28] sm:$0xff]  ;;  %v513_v8 = vld [vmem:[%s448_s22] sm:$0xff]  ;;  %v522_v11 = vld [vmem:[%s3043_s1 + $0x38] sm:$0xff]  ;;  %742 = vmatprep.mubr.f32.mxu1 %v2519_v29  ;;  %508 = vst.msk [vmem:[#allocation3] sm:$0xff] %vm507_vm0, %v2519_v29  ;;  %vm505_vm3 = vcmask 287744   ;;  %vm509_vm8 = vcmask 517120  }
  0x94   : > { %2084 = vmatprep.subr.bf16.mxu0 %v2083_v3  ;;  %1947 = vmatprep.mubr.msk.f32.mxu0 %vm507_vm0, %v513_v8  ;;  %v2091_v9 = vpack.c.bf16 %v520_v7, %v519_v6  ;;  %v521_v10 = vld [vmem:[%s3043_s1 + $0x30] sm:$0xff]  ;;  %v514_v13 = vld [vmem:[%s448_s22 + $0x8] sm:$0xff]  ;;  %v655_v21 = vld [vmem:[#allocation8 + $0x50] sm:$0xff]  ;;  %503 = vst.msk [vmem:[#allocation2] sm:$0xff] %vm502_vm1, %v2519_v29  ;;  %s2520_s2 = smov 112   ;;  %vm971_vm9 = vcmask 122880  }
  0x95   : > { %2086 = vmatpush3.bf16.msra.mxu0 %v2083_v3  ;;  %v2095_v12 = vpack.c.bf16 %v522_v11, %v521_v10  ;;  %v656_v18 = vld [vmem:[#allocation8 + $0x58] sm:$0xff]  ;;  %v658_v19 = vld [vmem:[#allocation8 + $0x68] sm:$0xff]  ;;  %v657_v22 = vld [vmem:[#allocation8 + $0x60] sm:$0xff]  ;;  %504 = vst.msk [vmem:[#allocation2 + $0x8] sm:$0xff] %vm502_vm1, %v2519_v29  ;;  %vm989_vm10 = vcmask 124930   ;;  %vm997_vm11 = vcmask 126980  }
  0x96   : > { %2088 = vmatprep.subr.bf16.mxu0 %v2087_v5  ;;  %v2099_v20 = vpack.c.bf16 %v658_v19, %v656_v18  ;;  %v2101_v23 = vpack.c.bf16 %v657_v22, %v655_v21  ;;  %v660_v24 = vld [vmem:[#allocation8 + $0x78] sm:$0xff]  ;;  %v662_v25 = vld [vmem:[#allocation8 + $0x88] sm:$0xff]  ;;  %v659_v27 = vld [vmem:[#allocation8 + $0x70] sm:$0xff]  ;;  %506 = vst.msk [vmem:[#allocation2 + $0x10] sm:$0x3] %vm505_vm3, %v2519_v29  ;;  %vm1005_vm12 = vcmask 129030  }
  0x97   : > { %v2103_v26 = vpack.c.bf16 %v662_v25, %v660_v24  ;;  %v661_v28 = vld [vmem:[#allocation8 + $0x80] sm:$0xff]  ;;  %v664_v31 = vld [vmem:[#allocation8 + $0x98] sm:$0xf]  ;;  %v643_v32 = vld [vmem:[#allocation8 + $0x8] sm:$0xff]  ;;  %v944_v25 = vlaneseq  ;;  %510 = vst.msk [vmem:[#allocation3 + $0x8] sm:$0x3] %vm509_vm8, %v2519_v29 }
  0x98   : > { %2100 = vmatprep.subr.bf16.mxu1 %v2099_v20  ;;  %v2105_v30 = vpack.c.bf16 %v661_v28, %v659_v27  ;;  %v663_v33 = vld [vmem:[#allocation8 + $0x90] sm:$0xf]  ;;  %v645_v34 = vld [vmem:[#allocation8 + $0x18] sm:$0xff]  ;;  %v642_v58 = vld [vmem:[#allocation8] sm:$0xff]  ;;  %vm2522_vm13 = vmmov 0   ;;  %s2523_s11 = smov 96  }
  0x99   : > { %2090 = vmatpush3.bf16.msra.mxu0 %v2087_v5  ;;  %2102 = vmatpush1.bf16.msra.mxu1 %v2101_v23  ;;  %v2107_v35 = vpack.c.bf16 %v645_v34, %v643_v32  ;;  %v644_v59 = vld [vmem:[#allocation8 + $0x10] sm:$0xff]  ;;  %v647_v60 = vld [vmem:[#allocation8 + $0x28] sm:$0xff]  ;;  %v649_v61 = vld [vmem:[#allocation8 + $0x38] sm:$0xff]  ;;  %s2524_s23 = smov 80   ;;  %vm977_vm14 = vcmask 254080   ;;  %vm991_vm15 = vcmask 256130  }
  0x9a   : > { %2092 = vmatprep.subr.bf16.mxu0 %v2091_v9  ;;  %2104 = vmatprep.subr.bf16.mxu1 %v2103_v26  ;;  %v2109_v62 = vpack.c.bf16 %v644_v59, %v642_v58  ;;  %v2111_v63 = vpack.c.bf16 %v649_v61, %v647_v60  ;;  %v646_v0 = vld [vmem:[#allocation8 + $0x20] sm:$0xff]  ;;  %v648_v1 = vld [vmem:[#allocation8 + $0x30] sm:$0xff]  ;;  %v651_v4 = vld [vmem:[#allocation8 + $0x48] sm:$0xf]  ;;  %v945_v26 = vshrl.u32 %v944_v25, 7  ;;  %vm982_vm3 = vcmask 385280  }
  0x9b   : > { %v2113_v3 = vpack.c.bf16 %v648_v1, %v646_v0  ;;  %v844_v6 = vld [vmem:[#allocation8 + $0xa8] sm:$0xff]  ;;  %v846_v7 = vld [vmem:[#allocation8 + $0xb8] sm:$0xff]  ;;  %v843_v8 = vld [vmem:[#allocation8 + $0xa0] sm:$0xff]  ;;  %vm995_vm8 = vcmask 518530   ;;  %s3086_s10 = sld [smem:[#allocation23_spill]]  ;;  %s3087_s20 = sld [smem:[#allocation21_spill]] }
  0x9c   : > { %v848_v10 = vld [vmem:[#allocation8 + $0xc8] sm:$0xff]  ;;  %v850_v11 = vld [vmem:[#allocation8 + $0xd8] sm:$0xff]  ;;  %v851_v22 = vld [vmem:[#allocation8 + $0xe0] sm:$0xf]  ;;  %v946_v27 = vsub.s32 0, %v945_v26  ;;  %s3088_s22 = sld [smem:[#allocation22_spill]] }
  0x9d   : > { %2094 = vmatpush3.bf16.msra.mxu0 %v2091_v9  ;;  %2106 = vmatpush1.bf16.msra.mxu1 %v2105_v30  ;;  %v845_v9 = vld [vmem:[#allocation8 + $0xb0] sm:$0xff]  ;;  %v852_v21 = vld [vmem:[#allocation8 + $0xe8] sm:$0xf]  ;;  %v1065_v59 = vld [vmem:[#allocation10 + $0x70] sm:$0xff]  ;;  %s3089_s19 = sld [smem:[#allocation24_spill]]  ;;  %s1854_s30 = sshll.u32 %s2618_s29, 4 }
  0x9e   : > { %2096 = vmatprep.subr.bf16.mxu0 %v2095_v12  ;;  %1831 = vmatprep.subr.msk.mxu1 %vm671_vm2, %v664_v31  ;;  %v942_v28 = vld [vmem:[%s3045_s3] sm:$0x3]  ;;  %v1066_v60 = vld [vmem:[#allocation10 + $0x78] sm:$0xff]  ;;  %s501_s17 = scalar_lea.vmem [#allocation13], %s2796_s15  ;;  %s1708_s14 = scalar_lea.sflag [#allocation7], %s2796_s15 }
  0x9f   : > { %v951_v30 = vld [vmem:[%s3046_s4] sm:$0x3]  ;;  %v947_v31 = vrot.slane %v942_v28, %v946_v27  ;;  %v2133_v61 = vpack.c.bf16 %v1066_v60, %v1065_v59  ;;  %v1345_v60 = vld [vmem:[#allocation11 + $0x8] sm:$0xff]  ;;  %s2526_s29 = smov [#allocation13]  }
  0xa0   : > { %v956_v32 = vrot.slane %v951_v30, %v946_v27  ;;  %v1219_v26 = vld [vmem:[#allocation10 + $0xa0] sm:$0xff]  ;;  %v1220_v27 = vld [vmem:[#allocation10 + $0xa8] sm:$0xff]  ;;  %v1221_v30 = vld [vmem:[#allocation10 + $0xb0] sm:$0xff] }
  0xa1   : > { %2098 = vmatpush3.bf16.msra.mxu0 %v2095_v12  ;;  %1832 = vmatpush1.msk.msra.mxu1 %vm671_vm2, %v663_v33  ;;  %v650_v12 = vld [vmem:[#allocation8 + $0x40] sm:$0xf]  ;;  %v2154_v28 = vpack.c.bf16 %v1220_v27, %v1219_v26  ;;  %v1344_v59 = vld [vmem:[#allocation11] sm:$0xff] }
  0xa2   : > { %2108 = vmatprep.subr.bf16.mxu1 %v2107_v35  ;;  %v1627_v27 = vld [vmem:[%s3086_s10 + $0x20] sm:$0xff] }
  0xa4   : > { %1948 = vmatmul.mubr.msk.f32.vlgmr.msra.gmra.mrb[0].mxu0 %vm507_vm0, %v514_v13  ;;  %v2115_v13 = vpack.c.bf16 %v846_v7, %v844_v6  ;;  %v1049_v6 = vld [vmem:[#allocation10] sm:$0xff]  ;;  %v1050_v7 = vld [vmem:[#allocation10 + $0x8] sm:$0xff] }
  0xa5   : > { %1966 = vmatprep.mubr.msk.f32.mxu0 %vm2522_vm13, %v2519_v29 }
 0x177   : > { %v1949_v14 = vpop.f32.mrb[0].mxu0 }
 0x178   : > { %v595_v15 = vpop.f32.mrb[1].mxu0  ;;  %v605_v17 = vmul.f32 %v1949_v14, %v1949_v14  ;;  %v2117_v14 = vpack.c.bf16 %v845_v9, %v843_v8  ;;  %v2136_v8 = vpack.c.bf16 %v1050_v7, %v1049_v6  ;;  %v1051_v9 = vld [vmem:[#allocation10 + $0x10] sm:$0xff]  ;;  %v1351_v6 = vld [vmem:[#allocation11 + $0x38] sm:$0xff] }
 0x179   : > { %v604_v16 = vmul.f32 %v595_v15, %v595_v15  ;;  %v2119_v15 = vpack.c.bf16 %v850_v11, %v848_v10  ;;  %v1052_v10 = vld [vmem:[#allocation10 + $0x18] sm:$0xff] }
 0x17b   : > { %608 = vrot.lane.b32.xlu0 %v604_v16, %s2518_s9 }
 0x17f   : > { %610 = vrot.lane.b32.xlu0 %v605_v17, %s2518_s9 }
 0x1ed   : > { %v609_v36 = vpop.permute.xlu0 %608 }
 0x1ee   : > { %v614_v37 = vadd.f32 %v609_v36, %v604_v16  ;;  %v847_v16 = vld [vmem:[#allocation8 + $0xc0] sm:$0xff] }
 0x1f0   : > { %2312 = vrsqrt.f32 %v614_v37  ;;  %vm618_vm4 = vcmp.eq.f32.partialorder %v614_v37, inf  ;;  %v621_v42 = vand.u32 2147483648, %v614_v37  ;;  %vm620_vm5 = vcmp.eq.f32.partialorder %v614_v37, 0.0 }
 0x1f1   : > { %v611_v38 = vpop.permute.xlu0 %610 }
 0x1f2   : > { %v615_v39 = vadd.f32 %v611_v38, %v605_v17  ;;  %v849_v17 = vld [vmem:[#allocation8 + $0xd0] sm:$0xff] }
 0x1f3   : > { %v2121_v19 = vpack.c.bf16 %v849_v17, %v847_v16  ;;  %v1055_v16 = vld [vmem:[#allocation10 + $0x30] sm:$0xff]  ;;  %v1056_v17 = vld [vmem:[#allocation10 + $0x38] sm:$0xff] }
 0x1f4   : > { %2314 = vrsqrt.f32 %v615_v39  ;;  %vm625_vm6 = vcmp.eq.f32.partialorder %v615_v39, inf  ;;  %v628_v48 = vand.u32 2147483648, %v615_v39  ;;  %vm627_vm7 = vcmp.eq.f32.partialorder %v615_v39, 0.0 }
 0x1fa   : > { %v2313_v40 = vpop.eup %2312 }
 0x1fb   : > { %v617_v41 = vmul.f32 %v2313_v40, %v614_v37 }
 0x1fd   : > { %v619_v43 = vsel %vm618_vm4, %v614_v37, %v617_v41  ;;  %vm993_vm4 = vcmask 387330  }
 0x1fe   : > { %v2315_v44 = vpop.eup %2314  ;;  %v622_v45 = vsel %vm620_vm5, %v621_v42, %v619_v43  ;;  %vm1001_vm5 = vcmask 389380  }
 0x1ff   : > { %v630_v46 = vadd.f32 1e-06, %v622_v45  ;;  %v624_v47 = vmul.f32 %v2315_v44, %v615_v39 }
 0x201   : > { %v632_v49 = vadd.f32 1.0, %v630_v46  ;;  %v626_v50 = vsel %vm625_vm6, %v615_v39, %v624_v47  ;;  %v2521_v47 = vmov 0.0|0.0   ;;  %vm1009_vm6 = vcmask 391430  }
 0x202   : > { %v629_v51 = vsel %vm627_vm7, %v628_v48, %v626_v50  ;;  %2123 = vmatprep.subr.bf16.mxu0 %v2521_v47  ;;  %v1059_v48 = vld [vmem:[#allocation10 + $0x40] sm:$0xff]  ;;  %vm987_vm7 = vcmask 516480  }
 0x203   : > { %2316 = vlog2.f32 %v632_v49  ;;  %v631_v52 = vadd.f32 1e-06, %v629_v51  ;;  %v1060_v49 = vld [vmem:[#allocation10 + $0x48] sm:$0xff]  ;;  %v1061_v51 = vld [vmem:[#allocation10 + $0x50] sm:$0xff] }
 0x204   : > { %v2124_v50 = vpack.c.bf16 %v1060_v49, %v1059_v48 }
 0x205   : > { %v633_v53 = vadd.f32 1.0, %v631_v52  ;;  %v1062_v52 = vld [vmem:[#allocation10 + $0x58] sm:$0xff] }
 0x206   : > { %2125 = vmatpush3.bf16.msra.mxu0 %v2124_v50  ;;  %v1358_v50 = vld [vmem:[#allocation11 + $0x60] sm:$0xff] }
 0x207   : > { %2318 = vlog2.f32 %v633_v53  ;;  %2126 = vmatprep.subr.bf16.mxu0 %v2521_v47  ;;  %v2127_v53 = vpack.c.bf16 %v1062_v52, %v1061_v51  ;;  %v1359_v51 = vld [vmem:[#allocation11 + $0x68] sm:$0xff] }
 0x208   : > { %v2166_v52 = vpack.c.bf16 %v1359_v51, %v1358_v50 }
 0x20a   : > { %2128 = vmatpush3.bf16.msra.mxu0 %v2127_v53  ;;  %v1360_v53 = vld [vmem:[#allocation11 + $0x70] sm:$0xff] }
 0x20b   : > { %2129 = vmatprep.subr.bf16.mxu0 %v2521_v47 }
 0x20d   : > { %v2317_v54 = vpop.eup %2316 }
 0x20e   : > { %v635_v55 = vmul.f32 0.6931472, %v2317_v54  ;;  %v1063_v54 = vld [vmem:[#allocation10 + $0x60] sm:$0xff] }
 0x210   : > { %638 = vst.msk [vmem:[#allocation2 + $0x1] sm:$0xff] %vm502_vm1, %v635_v55  ;;  %v1064_v55 = vld [vmem:[#allocation10 + $0x68] sm:$0xff] }
 0x211   : > { %v2319_v56 = vpop.eup %2318 }
 0x212   : > { %v637_v57 = vmul.f32 0.6931472, %v2319_v56 }
 0x214   : > { %639 = vst.msk [vmem:[#allocation2 + $0x9] sm:$0xff] %vm502_vm1, %v637_v57  ;;  %v2130_v57 = vpack.c.bf16 %v1064_v55, %v1063_v54  ;;  %v1361_v54 = vld [vmem:[#allocation11 + $0x78] sm:$0xff] }
 0x215   : > { %v2169_v55 = vpack.c.bf16 %v1361_v54, %v1360_v53 }
 0x216   : > { %2131 = vmatpush3.bf16.msra.mxu0 %v2130_v57 }
 0x217   : > { %v652_v2 = vld [vmem:[#allocation2 + $0x1] sm:$0xff]  ;;  %2132 = vmatprep.subr.bf16.mxu0 %v2521_v47 }
 0x218   : > { %1833 = vmatmul.mubr.msk.f32.vlgmr.msra.gmra.mrb[0].mxu1 %vm502_vm1, %v652_v2  ;;  %v640_v18 = vld [vmem:[#allocation2] sm:$0xff] }
 0x219   : > { %2110 = vmatpush1.bf16.msra.mxu1 %v2109_v62  ;;  %747 = vmatprep.mubr.f32.mxu1 %v2519_v29 }
 0x21a   : > { %2112 = vmatprep.subr.bf16.mxu1 %v2111_v63  ;;  %2134 = vmatpush3.bf16.msra.mxu0 %v2133_v61  ;;  %v2172_v61 = vpack.c.bf16 %v1345_v60, %v1344_v59 }
 0x21b   : > { %v653_v5 = vld [vmem:[#allocation2 + $0x9] sm:$0xff]  ;;  %2135 = vmatprep.subr.bf16.mxu0 %v2521_v47 }
 0x21c   : > { %1834 = vmatmul.mubr.msk.f32.gmra.mrb[2].mxu1 %vm502_vm1, %v653_v5  ;;  %v641_v20 = vld [vmem:[#allocation2 + $0x8] sm:$0xff] }
 0x21d   : > { %2114 = vmatpush1.bf16.msra.mxu1 %v2113_v3  ;;  %829 = vmatprep.mubr.f32.mxu1 %v2519_v29  ;;  %v840_v23 = vld [vmem:[#allocation2 + $0x2] sm:$0xff]  ;;  %v841_v24 = vld [vmem:[#allocation2 + $0xa] sm:$0xff] }
 0x21e   : > { %1835 = vmatprep.subr.msk.mxu1 %vm671_vm2, %v651_v4 }
 0x221   : > { %1836 = vmatpush1.msk.msra.mxu1 %vm671_vm2, %v650_v12  ;;  %v2139_v12 = vpack.c.bf16 %v1052_v10, %v1051_v9  ;;  %v1511_v9 = vld [vmem:[#allocation11 + $0x88] sm:$0xff] }
 0x222   : > { %1837 = vmatmul.mubr.msk.f32.vlgmr.msra.gmra.mrb[0].mxu1 %vm502_vm1, %v640_v18  ;;  %2116 = vmatprep.subr.bf16.mxu1 %v2115_v13  ;;  %v1053_v13 = vld [vmem:[#allocation10 + $0x20] sm:$0xff]  ;;  %v2145_v18 = vpack.c.bf16 %v1056_v17, %v1055_v16  ;;  %v1515_v16 = vld [vmem:[#allocation11 + $0xa8] sm:$0xff] }
 0x223   : > { %2118 = vmatpush1.bf16.msra.mxu1 %v2117_v14  ;;  %834 = vmatprep.mubr.f32.mxu1 %v2519_v29  ;;  %v1054_v14 = vld [vmem:[#allocation10 + $0x28] sm:$0xff] }
 0x224   : > { %2120 = vmatprep.subr.bf16.mxu1 %v2119_v15  ;;  %v2142_v15 = vpack.c.bf16 %v1054_v14, %v1053_v13 }
 0x226   : > { %1838 = vmatmul.mubr.msk.f32.gmra.mrb[2].mxu1 %vm502_vm1, %v641_v20  ;;  %v1216_v20 = vld [vmem:[#allocation10 + $0x88] sm:$0xff] }
 0x227   : > { %2122 = vmatpush1.bf16.msra.mxu1 %v2121_v19  ;;  %929 = vmatprep.mubr.f32.mxu1 %v2519_v29  ;;  %v1215_v19 = vld [vmem:[#allocation10 + $0x80] sm:$0xff] }
 0x228   : > { %1839 = vmatprep.subr.msk.mxu1 %vm671_vm2, %v852_v21  ;;  %v2148_v21 = vpack.c.bf16 %v1216_v20, %v1215_v19  ;;  %v1517_v19 = vld [vmem:[#allocation11 + $0xb8] sm:$0xff] }
 0x22b   : > { %1840 = vmatpush1.msk.msra.mxu1 %vm671_vm2, %v851_v22  ;;  %vm1007_vm2 = vcmask 260230   ;;  %v1217_v22 = vld [vmem:[#allocation10 + $0x90] sm:$0xff] }
 0x22c   : > { %1841 = vmatmul.mubr.msk.f32.vlgmr.msra.gmra.mrb[0].mxu1 %vm502_vm1, %v840_v23  ;;  %2159 = vmatprep.subr.bf16.mxu1 %v2521_v47  ;;  %v1218_v23 = vld [vmem:[#allocation10 + $0x98] sm:$0xff] }
 0x22d   : > { %934 = vmatprep.mubr.f32.mxu1 %v2519_v29  ;;  %v2151_v25 = vpack.c.bf16 %v1218_v23, %v1217_v22  ;;  %v1624_v22 = vld [vmem:[%s3086_s10 + $0x8] sm:$0xff]  ;;  %v1625_v23 = vld [vmem:[%s3086_s10 + $0x10] sm:$0xff] }
 0x230   : > { %1842 = vmatmul.mubr.msk.f32.gmra.mrb[2].mxu1 %vm502_vm1, %v841_v24  ;;  %vm999_vm1 = vcmask 258180  }
 0x231   : > { %2023 = vmatprep.mubr.msk.f32.mxu1 %vm2522_vm13, %v2519_v29 }
 0x2ff   : > { %v931_v33 = vpop.f32.mrb[0].mxu1 }
 0x300   : > { %v949_v34 = vmul.f32 %v947_v31, %v931_v33  ;;  %v933_v35 = vpop.f32.mrb[1].mxu1 }
 0x301   : > { %v1847_v35 = vld [vmem:[%s3049_s7] ss:$0 sm:$0xff] }
 0x302   : > { %v958_v36 = vadd.f32 %v956_v32, %v949_v34  ;;  %v1846_v34 = vld [vmem:[%s3048_s6] ss:$0 sm:$0xff] }
 0x303   : > { %v936_v37 = vpop.f32.mrb[2].mxu1 }
 0x304   : > { %v960_v38 = vmax.f32 %v958_v36, 0.0  ;;  %v950_v39 = vmul.f32 %v947_v31, %v936_v37  ;;  %v938_v40 = vpop.f32.mrb[3].mxu1  ;;  %v1222_v31 = vld [vmem:[#allocation10 + $0xb8] sm:$0xff]  ;;  %v1354_v37 = vld [vmem:[#allocation11 + $0x40] sm:$0xff] }
 0x306   : > { %v959_v41 = vadd.f32 %v956_v32, %v950_v39  ;;  %v963_v42 = vrot.slane %v960_v38, 1  ;;  %v2157_v32 = vpack.c.bf16 %v1222_v31, %v1221_v30  ;;  %v1356_v39 = vld [vmem:[#allocation11 + $0x50] sm:$0xff]  ;;  %v1851_v31 = vld [vmem:[%s3087_s20] ss:$0 sm:$0xff]  ;;  %s1720_s20 = sshll.u32 %s501_s17, 4  ;;  %s3000_s20 = int_to_ptr.vmem [resolvable:$true] %s1720_s20 }
 0x307   : > { %s2434_s21 = scalar_lea.vmem %s3000_s20, 16 }
 0x308   : > { %v961_v43 = vmax.f32 %v959_v41, 0.0  ;;  %v965_v44 = vmax.f32 %v960_v38, %v963_v42  ;;  %v1355_v38 = vld [vmem:[#allocation11 + $0x48] sm:$0xff]  ;;  %p2435_p10 = scmp.ne.s32.totalorder %s3000_s20, %s2434_s21 }
 0x309   : > { %v2160_v42 = vpack.c.bf16 %v1355_v38, %v1354_v37 }
 0x30a   : > { %v1014_v45 = vrot.slane %v961_v43, 1  ;;  %967 = vrot.lane.b32.xlu1 %v965_v44, %s2520_s2  ;;  %p2436_p3 = pnand %p2435_p10, %p2745_p5 }
 0x30b   : > { %2161 = vmatpush3.bf16.msra.mxu1 %v2160_v42 }
 0x30c   : > { %v1016_v46 = vmax.f32 %v961_v43, %v1014_v45  ;;  %v1357_v43 = vld [vmem:[#allocation11 + $0x58] sm:$0xff]  ;;  %2162 = vmatprep.subr.bf16.mxu1 %v2521_v47  ;;  %p2437_p7 = pneg %p2436_p3 }
 0x30d   : > { %v2163_v45 = vpack.c.bf16 %v1357_v43, %v1356_v39 }
 0x30e   : > { %1018 = vrot.lane.b32.xlu1 %v1016_v46, %s2520_s2 }
 0x30f   : > { %2164 = vmatpush3.bf16.msra.mxu1 %v2163_v45 }
 0x310   : > { %2165 = vmatprep.subr.bf16.mxu1 %v2521_v47 }
 0x313   : > { %2167 = vmatpush3.bf16.msra.mxu1 %v2166_v52 }
 0x314   : > { %2168 = vmatprep.subr.bf16.mxu1 %v2521_v47 }
 0x317   : > { %2170 = vmatpush3.bf16.msra.mxu1 %v2169_v55 }
 0x318   : > { %2171 = vmatprep.subr.bf16.mxu1 %v2521_v47 }
 0x37c   : > { %v968_v56 = vpop.permute.xlu1 %967 }
 0x37d   : > { %v970_v58 = vmax.f32 %v965_v44, %v968_v56 }
 0x37f   : > { %974 = vrot.lane.b32.xlu0 %v970_v58, %s2520_s2  ;;  %972 = vst.msk [vmem:[#allocation3 + $0x1] sm:$0x1] %vm971_vm9, %v970_v58 }
 0x380   : > { %990 = vst.msk [vmem:[#allocation3] sm:$0x4] %vm989_vm10, %v970_v58  ;;  %v1019_v62 = vpop.permute.xlu1 %1018 }
 0x381   : > { %998 = vst.msk [vmem:[#allocation3 - $0x1] sm:$0x10] %vm997_vm11, %v970_v58  ;;  %v1021_v63 = vmax.f32 %v1016_v46, %v1019_v62  ;;  %v1346_v62 = vld [vmem:[#allocation11 + $0x10] sm:$0xff] }
 0x382   : > { %1006 = vst.msk [vmem:[#allocation3 - $0x2] sm:$0x40] %vm1005_vm12, %v970_v58 }
 0x383   : > { %979 = vrot.lane.b32.xlu0 %v970_v58, %s2523_s11  ;;  %1024 = vrot.lane.b32.xlu1 %v1021_v63, %s2520_s2  ;;  %1022 = vst.msk [vmem:[#allocation3 + $0x5] sm:$0x1] %vm971_vm9, %v1021_v63  ;;  %vm1003_vm9 = vcmask 520580   ;;  %s2438_s2 = sshll.u32 %s2526_s29, 4  ;;  %s2439_s2 = int_to_ptr.vmem [resolvable:$false] %s2438_s2 }
 0x384   : > { %1036 = vst.msk [vmem:[#allocation3 + $0x4] sm:$0x4] %vm989_vm10, %v1021_v63  ;;  %vm1011_vm10 = vcmask 522630   ;;  %p2441_p12 = scmp.lt.s32.totalorder %s3000_s20, %s2439_s2 }
 0x385   : > { %1040 = vst.msk [vmem:[#allocation3 + $0x3] sm:$0x10] %vm997_vm11, %v1021_v63  ;;  %vm511_vm11 = vcmask 521216  }
 0x386   : > { %1044 = vst.msk [vmem:[#allocation3 + $0x2] sm:$0x40] %vm1005_vm12, %v1021_v63  ;;  %vm1323_vm12 = vcmask 253952  }
 0x387   : > { %984 = vrot.lane.b32.xlu0 %v970_v58, %s2524_s23  ;;  %1028 = vrot.lane.b32.xlu1 %v1021_v63, %s2523_s11  ;;  %512 = vst.msk [vmem:[#allocation4] sm:$0x3f] %vm511_vm11, %v2519_v29 }
 0x38b   : > { %1032 = vrot.lane.b32.xlu1 %v1021_v63, %s2524_s23  ;;  %v1347_v63 = vld [vmem:[#allocation11 + $0x18] sm:$0xff] }
 0x3f1   : > { %v975_v0 = vpop.permute.xlu0 %974 }
 0x3f2   : > { %978 = vst.msk [vmem:[#allocation3 + $0x1] sm:$0x1] %vm977_vm14, %v975_v0 }
 0x3f3   : > { %992 = vst.msk [vmem:[#allocation3] sm:$0x4] %vm991_vm15, %v975_v0 }
 0x3f4   : > { %1000 = vst.msk [vmem:[#allocation3 - $0x1] sm:$0x10] %vm999_vm1, %v975_v0 }
 0x3f5   : > { %1008 = vst.msk [vmem:[#allocation3 - $0x2] sm:$0x40] %vm1007_vm2, %v975_v0  ;;  %v980_v1 = vpop.permute.xlu0 %979  ;;  %v1025_v2 = vpop.permute.xlu1 %1024 }
 0x3f6   : > { %983 = vst.msk [vmem:[#allocation3 + $0x1] sm:$0x1] %vm982_vm3, %v980_v1 }
 0x3f7   : > { %994 = vst.msk [vmem:[#allocation3] sm:$0x4] %vm993_vm4, %v980_v1 }
 0x3f8   : > { %1002 = vst.msk [vmem:[#allocation3 - $0x1] sm:$0x10] %vm1001_vm5, %v980_v1 }
 0x3f9   : > { %1010 = vst.msk [vmem:[#allocation3 - $0x2] sm:$0x40] %vm1009_vm6, %v980_v1  ;;  %v985_v3 = vpop.permute.xlu0 %984  ;;  %v1029_v4 = vpop.permute.xlu1 %1028  ;;  %v2175_v1 = vpack.c.bf16 %v1347_v63, %v1346_v62 }
 0x3fa   : > { %1027 = vst.msk [vmem:[#allocation3 + $0x5] sm:$0x1] %vm977_vm14, %v1025_v2  ;;  %vm1331_vm14 = vcmask 256002  }
 0x3fb   : > { %1037 = vst.msk [vmem:[#allocation3 + $0x4] sm:$0x4] %vm991_vm15, %v1025_v2  ;;  %vm1335_vm15 = vcmask 258052  }
 0x3fc   : > { %1041 = vst.msk [vmem:[#allocation3 + $0x3] sm:$0x10] %vm999_vm1, %v1025_v2  ;;  %vm1339_vm1 = vcmask 260102  }
 0x3fd   : > { %1045 = vst.msk [vmem:[#allocation3 + $0x2] sm:$0x40] %vm1007_vm2, %v1025_v2  ;;  %v1033_v5 = vpop.permute.xlu1 %1032  ;;  %vm1329_vm2 = vcmask 516352   ;;  %v1348_v2 = vld [vmem:[#allocation11 + $0x20] sm:$0xff] }
 0x3fe   : > { %988 = vst.msk [vmem:[#allocation3 + $0x1] sm:$0x1] %vm987_vm7, %v985_v3 }
 0x3ff   : > { %996 = vst.msk [vmem:[#allocation3] sm:$0x4] %vm995_vm8, %v985_v3 }
 0x400   : > { %1004 = vst.msk [vmem:[#allocation3 - $0x1] sm:$0x10] %vm1003_vm9, %v985_v3 }
 0x401   : > { %1012 = vst.msk [vmem:[#allocation3 - $0x2] sm:$0x40] %vm1011_vm10, %v985_v3  ;;  %v1349_v3 = vld [vmem:[#allocation11 + $0x28] sm:$0xff] }
 0x402   : > { %1031 = vst.msk [vmem:[#allocation3 + $0x5] sm:$0x1] %vm982_vm3, %v1029_v4  ;;  %vm1333_vm3 = vcmask 518402  }
 0x403   : > { %1038 = vst.msk [vmem:[#allocation3 + $0x4] sm:$0x4] %vm993_vm4, %v1029_v4  ;;  %vm1337_vm4 = vcmask 520452  }
 0x404   : > { %1042 = vst.msk [vmem:[#allocation3 + $0x3] sm:$0x10] %vm1001_vm5, %v1029_v4  ;;  %vm1341_vm5 = vcmask 522502  }
 0x405   : > { %1046 = vst.msk [vmem:[#allocation3 + $0x2] sm:$0x40] %vm1009_vm6, %v1029_v4  ;;  %v2178_v4 = vpack.c.bf16 %v1349_v3, %v1348_v2 }
 0x406   : > { %1035 = vst.msk [vmem:[#allocation3 + $0x5] sm:$0x1] %vm987_vm7, %v1033_v5 }
 0x407   : > { %1039 = vst.msk [vmem:[#allocation3 + $0x4] sm:$0x4] %vm995_vm8, %v1033_v5 }
 0x408   : > { %1043 = vst.msk [vmem:[#allocation3 + $0x3] sm:$0x10] %vm1003_vm9, %v1033_v5 }
 0x409   : > { %1047 = vst.msk [vmem:[#allocation3 + $0x2] sm:$0x40] %vm1011_vm10, %v1033_v5  ;;  %v1350_v5 = vld [vmem:[#allocation11 + $0x30] sm:$0xff] }
 0x40a   : > { %v2181_v7 = vpack.c.bf16 %v1351_v6, %v1350_v5 }
 0x40f   : > { %v1048_v24 = vld [vmem:[#allocation3] sm:$0xff] }
 0x410   : > { %v1057_v11 = vld [vmem:[#allocation3 + $0x1] sm:$0xff] }
 0x411   : > { %1967 = vmatmul.mubr.msk.f32.vlgmr.msra.gmra.mrb[2].mxu0 %vm507_vm0, %v1057_v11  ;;  %v1213_v33 = vld [vmem:[#allocation3 + $0x2] sm:$0xff]  ;;  %v1512_v11 = vld [vmem:[#allocation11 + $0x90] sm:$0xff] }
 0x412   : > { %2137 = vmatpush3.bf16.msra.mxu0 %v2136_v8  ;;  %1985 = vmatprep.mubr.msk.f32.mxu0 %vm2522_vm13, %v2519_v29  ;;  %v1510_v8 = vld [vmem:[#allocation11 + $0x80] sm:$0xff] }
 0x413   : > { %2138 = vmatprep.subr.bf16.mxu0 %v2521_v47  ;;  %v2184_v10 = vpack.c.bf16 %v1511_v9, %v1510_v8 }
 0x416   : > { %2140 = vmatpush3.bf16.msra.mxu0 %v2139_v12  ;;  %v1513_v12 = vld [vmem:[#allocation11 + $0x98] sm:$0xff] }
 0x417   : > { %2141 = vmatprep.subr.bf16.mxu0 %v2521_v47  ;;  %v2187_v14 = vpack.c.bf16 %v1513_v12, %v1512_v11 }
 0x41a   : > { %2143 = vmatpush3.bf16.msra.mxu0 %v2142_v15  ;;  %v1514_v15 = vld [vmem:[#allocation11 + $0xa0] sm:$0xff] }
 0x41b   : > { %2144 = vmatprep.subr.bf16.mxu0 %v2521_v47  ;;  %v2190_v17 = vpack.c.bf16 %v1515_v16, %v1514_v15 }
 0x41e   : > { %2146 = vmatpush3.bf16.msra.mxu0 %v2145_v18  ;;  %v1516_v18 = vld [vmem:[#allocation11 + $0xb0] sm:$0xff] }
 0x41f   : > { %2147 = vmatprep.subr.bf16.mxu0 %v2521_v47  ;;  %v2193_v20 = vpack.c.bf16 %v1517_v19, %v1516_v18 }
 0x421   : > { %1986 = vmatmul.mubr.msk.f32.vlgmr.msra.gmra.mrb[2].mxu0 %vm507_vm0, %v1048_v24 }
 0x422   : > { %2149 = vmatpush3.bf16.msra.mxu0 %v2148_v21  ;;  %2004 = vmatprep.mubr.msk.f32.mxu0 %vm2522_vm13, %v2519_v29 }
 0x423   : > { %2150 = vmatprep.subr.bf16.mxu0 %v2521_v47 }
 0x426   : > { %2152 = vmatpush3.bf16.msra.mxu0 %v2151_v25  ;;  %v1626_v25 = vld [vmem:[%s3086_s10 + $0x18] sm:$0xff] }
 0x427   : > { %2153 = vmatprep.subr.bf16.mxu0 %v2521_v47  ;;  %v2199_v26 = vpack.c.bf16 %v1626_v25, %v1625_v23 }
 0x42a   : > { %2155 = vmatpush3.bf16.msra.mxu0 %v2154_v28  ;;  %v1628_v28 = vld [vmem:[%s3086_s10 + $0x28] sm:$0xff] }
 0x42b   : > { %2156 = vmatprep.subr.bf16.mxu0 %v2521_v47  ;;  %v2202_v30 = vpack.c.bf16 %v1628_v28, %v1627_v27 }
 0x42e   : > { %2158 = vmatpush3.bf16.msra.mxu0 %v2157_v32 }
 0x42f   : > { %2195 = vmatprep.subr.bf16.mxu0 %v2521_v47 }
 0x431   : > { %2005 = vmatmul.mubr.msk.f32.vlgmr.msra.gmra.mrb[2].mxu0 %vm507_vm0, %v1213_v33  ;;  %v1852_v33 = vld [vmem:[%s3088_s22] ss:$0 sm:$0xff]  ;;  %s3090_s22 = sld [smem:[#allocation25_spill]] }
 0x432   : > { %2080 = vmatprep.mubr.msk.f32.mxu0 %vm2522_vm13, %v2519_v29 }
 0x437   : > { %s2998_s25 = scalar_lea.hbm %s3090_s22, %s1854_s30 }
 0x504   : > { %v1292_v36 = vpop.f32.mrb[2].mxu0 }
 0x505   : > { %v1304_v40 = vmul.f32 %v1846_v34, %v1292_v36  ;;  %v2006_v41 = vpop.f32.mrb[3].mxu0  ;;  %v1629_v34 = vld [vmem:[%s3086_s10 + $0x30] sm:$0xff] }
 0x507   : > { %v1312_v44 = vadd.f32 %v1847_v35, %v1304_v40  ;;  %v1630_v35 = vld [vmem:[%s3086_s10 + $0x38] sm:$0xff] }
 0x508   : > { %v2205_v38 = vpack.c.bf16 %v1630_v35, %v1629_v34 }
 0x509   : > { %v1313_v46 = vmax.f32 %v1312_v44, 0.0 }
 0x50b   : > { %v1315_v48 = vrot.slane %v1313_v46, 1 }
 0x50d   : > { %v1317_v49 = vmax.f32 %v1313_v46, %v1315_v48  ;;  %v1631_v48 = vld [vmem:[%s3089_s19] sm:$0x1] }
 0x50f   : > { %1319 = vrot.lane.b32.xlu0 %v1317_v49, %s2523_s11 }
 0x581   : > { %v1320_v56 = vpop.permute.xlu0 %1319 }
 0x582   : > { %v1322_v57 = vmax.f32 %v1317_v49, %v1320_v56 }
 0x584   : > { %1326 = vrot.lane.b32.xlu1 %v1322_v57, %s2523_s11  ;;  %1324 = vst.msk [vmem:[#allocation4 + $0x1] sm:$0x1] %vm1323_vm12, %v1322_v57  ;;  %s2525_s11 = smov 64  }
 0x585   : > { %1332 = vst.msk [vmem:[#allocation4] sm:$0x4] %vm1331_vm14, %v1322_v57 }
 0x586   : > { %1336 = vst.msk [vmem:[#allocation4 - $0x1] sm:$0x10] %vm1335_vm15, %v1322_v57 }
 0x587   : > { %1340 = vst.msk [vmem:[#allocation4 - $0x2] sm:$0x40] %vm1339_vm1, %v1322_v57 }
 0x5f6   : > { %v1327_v58 = vpop.permute.xlu1 %1326 }
 0x5f7   : > { %1330 = vst.msk [vmem:[#allocation4 + $0x1] sm:$0x1] %vm1329_vm2, %v1327_v58 }
 0x5f8   : > { %1334 = vst.msk [vmem:[#allocation4] sm:$0x4] %vm1333_vm3, %v1327_v58 }
 0x5f9   : > { %1338 = vst.msk [vmem:[#allocation4 - $0x1] sm:$0x10] %vm1337_vm4, %v1327_v58 }
 0x5fa   : > { %1342 = vst.msk [vmem:[#allocation4 - $0x2] sm:$0x40] %vm1341_vm5, %v1327_v58 }
 0x600   : > { %v1343_v13 = vld [vmem:[#allocation4] sm:$0xf] }
 0x601   : > { %v1352_v0 = vld [vmem:[#allocation4 + $0x1] sm:$0xf] }
 0x602   : > { %2024 = vmatmul.mubr.msk.f32.vlgmr.msra.gmra.mrb[4].mxu1 %vm507_vm0, %v1352_v0  ;;  %v1508_v21 = vld [vmem:[#allocation4 + $0x2] sm:$0xf] }
 0x603   : > { %2173 = vmatpush3.bf16.msra.mxu1 %v2172_v61  ;;  %2042 = vmatprep.mubr.msk.f32.mxu1 %vm2522_vm13, %v2519_v29 }
 0x604   : > { %2174 = vmatprep.subr.bf16.mxu1 %v2521_v47 }
 0x607   : > { %2176 = vmatpush3.bf16.msra.mxu1 %v2175_v1 }
 0x608   : > { %2177 = vmatprep.subr.bf16.mxu1 %v2521_v47 }
 0x60b   : > { %2179 = vmatpush3.bf16.msra.mxu1 %v2178_v4 }
 0x60c   : > { %2180 = vmatprep.subr.bf16.mxu1 %v2521_v47 }
 0x60f   : > { %2182 = vmatpush3.bf16.msra.mxu1 %v2181_v7 }
 0x610   : > { %2183 = vmatprep.subr.bf16.mxu1 %v2521_v47 }
 0x612   : > { %2043 = vmatmul.mubr.msk.f32.vlgmr.msra.gmra.mrb[4].mxu1 %vm507_vm0, %v1343_v13 }
 0x613   : > { %2185 = vmatpush3.bf16.msra.mxu1 %v2184_v10  ;;  %2061 = vmatprep.mubr.msk.f32.mxu1 %vm2522_vm13, %v2519_v29  ;;  %v1623_v29 = vld [vmem:[%s3086_s10] sm:$0xff]  ;;  %vm1705_vm13 = vcmask 32768  }
 0x614   : > { %2186 = vmatprep.subr.bf16.mxu1 %v2521_v47  ;;  %v2196_v24 = vpack.c.bf16 %v1624_v22, %v1623_v29 }
 0x616   : > { %2197 = vmatpush3.bf16.msra.mxu0 %v2196_v24 }
 0x617   : > { %2188 = vmatpush3.bf16.msra.mxu1 %v2187_v14  ;;  %2198 = vmatprep.subr.bf16.mxu0 %v2521_v47 }
 0x618   : > { %2189 = vmatprep.subr.bf16.mxu1 %v2521_v47 }
 0x61a   : > { %2200 = vmatpush3.bf16.msra.mxu0 %v2199_v26 }
 0x61b   : > { %2191 = vmatpush3.bf16.msra.mxu1 %v2190_v17  ;;  %2201 = vmatprep.subr.bf16.mxu0 %v2521_v47 }
 0x61c   : > { %2192 = vmatprep.subr.bf16.mxu1 %v2521_v47 }
 0x61e   : > { %2203 = vmatpush3.bf16.msra.mxu0 %v2202_v30 }
 0x61f   : > { %2194 = vmatpush3.bf16.msra.mxu1 %v2193_v20  ;;  %2204 = vmatprep.subr.bf16.mxu0 %v2521_v47 }
 0x622   : > { %2062 = vmatmul.mubr.msk.f32.vlgmr.msra.gmra.mrb[4].mxu1 %vm507_vm0, %v1508_v21  ;;  %2206 = vmatpush3.bf16.msra.mxu0 %v2205_v38 }
 0x6f5   : > { %v1587_v32 = vpop.f32.mrb[4].mxu1 }
 0x6f6   : > { %v1599_v36 = vmul.f32 %v1851_v31, %v1587_v32  ;;  %v2063_v37 = vpop.f32.mrb[5].mxu1 }
 0x6f8   : > { %v1607_v39 = vadd.f32 %v1852_v33, %v1599_v36 }
 0x6fa   : > { %v1608_v40 = vmax.f32 %v1607_v39, 0.0 }
 0x6fc   : > { %v1610_v41 = vrot.slane %v1608_v40, 1 }
 0x6fe   : > { %v1612_v42 = vmax.f32 %v1608_v40, %v1610_v41 }
 0x700   : > { %1614 = vrot.lane.b32.xlu0 %v1612_v42, %s2525_s11  ;;  %s2440_s11 = scalar_lea.vmem %s2439_s2, 32 }
 0x701   : > { %p2442_p2 = scmp.lt.s32.totalorder %s2440_s11, %s2434_s21 }
 0x703   : > { %p2443_p1 = por %p2442_p2, %p2441_p12 }
 0x705   : > { %p2444_p4 = pnand %p2443_p1, %p2437_p7 }
 0x772   : > { %v1615_v47 = vpop.permute.xlu0 %1614 }
 0x773   : > { %v1617_v43 = vmax.f32 %v1612_v42, %v1615_v47 }
 0x775   : > { %v1619_v44 = vrot.slane %v1617_v43, 2 }
 0x777   : > { %v1621_v45 = vadd.f32 %v1619_v44, %v1617_v43 }
 0x779   : > { %v1622_v46 = vmul.f32 0.5, %v1621_v45 }
 0x77b   : > { %2081 = vmatmul.mubr.msk.f32.vlgmr.msra.gmra.mrb[4].mxu0 %vm507_vm0, %v1622_v46 }
 0x84e   : > { %v1701_v49 = vpop.f32.mrb[4].mxu0 }
 0x84f   : > { %v1702_v50 = vadd.f32 %v1701_v49, %v1631_v48  ;;  %v2082_v51 = vpop.f32.mrb[5].mxu0 }
 0x851   : > { %1706 = vst.msk [vmem:[%s501_s17] sm:$0x1] %vm1705_vm13, %v1702_v50 }
 0x852   : > { %2447 = shalt.err (!%p2444_p4)
}
 0x853   : > { %s2448_s15 = scalar_lea.hbm %s2998_s25, 16  ;;  %s2452_s19 = scalar_lea.hbm %s3090_s22, 32 }
 0x854   : > { %p2449_p9 = scmp.ne.s32.totalorder %s2998_s25, %s2448_s15  ;;  %p2453_p11 = scmp.lt.u32.totalorder %s2998_s25, %s3090_s22 }
 0x855   : > { %p2454_p13 = scmp.lt.u32.totalorder %s2452_s19, %s2448_s15  ;;  %p2456_p10 = scmp.lt.u32.totalorder %s2448_s15, %s2998_s25 }
 0x856   : > { %p2450_p0 = pnand %p2449_p9, %p2745_p5 }
 0x857   : > { %p2455_p6 = por %p2454_p13, %p2453_p11 }
 0x858   : > { %p2451_p8 = pneg %p2450_p0 }
 0x859   : > { %p2457_p3 = por %p2456_p10, %p2455_p6 }
 0x85b   : > { %p2458_p7 = pnand %p2457_p3, %p2451_p8 }
 0x85d   : > { %2461 = shalt.err (!%p2458_p7)
}
 0x85e   : > { %2237 = dma.vmem_to_hbm [thread:$0]  (%p2745_p5), %s3000_s20, 16, %s2998_s25, %s1708_s14  }
 0x85f PF: > { %s3091_s16 = sld [smem:[#allocation18_spill]]  ;;  %s3092_s9 = sld [smem:[#allocation19_spill]] }
 0x860   : > { %p3094_p2 = scmp.ge.s32.totalorder %s2508_s28, 2 }
 0x865   : > { %s1732_s21 = sand.u32 1, %s3091_s16   ;;  %p3093_p12 = scmp.ne.s32.totalorder %s3092_s9, 0 }
 0x866   : > { %s1733_s29 = scalar_lea.sflag [#allocation7], %s1732_s21 }
 0x867   : > { %p2254_p1 = pnand %p3094_p2, %p3093_p12 }
 0x869   : > { %2491 = dma.done.wait (!%p2254_p1), %s1733_s29, 16  }
 0x86a   : > { %2493 = vsyncadd (!%p2254_p1), %s1733_s29, 4294967280  ;;  %p28_p4 = scmp.ge.s32.totalorder %s2710_s24, 4   ;;  %s3095_s25 = smov %s2500_s26 }
 0x86b   : > { %s3096_s26 = smov %s2504_s27  ;;  %s3097_s27 = smov %s2741_s12 }
 0x86c   : > { %s3098_s28 = smov %s2710_s24  ;;  %30 = sbr.rel (!%p28_p4) target bundleno = 14 (0xe), region = 135 }
 0x873   :  { %1737 = vsyncpa [#allocation6], 1 }
 0x874   :  { %1739 = vsyncpa [#allocation6 + $0x1], 1 }
 0x875   :  { %1740 = vsyncpa [#allocation9], 1 }
 0x876   :  { %1741 = vsyncpa [#allocation12], 1 }
 0x877   :  { %1742 = vsyncpa [#allocation7], 1 }
 0x878   :  { %1744 = vsyncpa [#allocation7 + $0x1], 1 }

</bundles_post_ra>
